<compile_context>
chip_gen: v7x
topology: tpu7x:2x2x1
jax: 0.10.0
libtpu: 0.0.40
codegen_flags: <defaults>
</compile_context>

<pallas_src>
import jax
import jax.numpy as jnp
from jax import lax
from jax.experimental import pallas as pl
from jax.experimental.pallas import tpu as pltpu


def _round_up(x, m):
    return (x + m - 1) // m * m


def mlp_kernel(x_ref, w1_ref, b1_ref, w2_ref, b2_ref, y_ref):
    # x_ref : (BB, D)  input tile (f32 or bf16)
    # w1_ref: (D, H)   hidden.weight^T
    # b1_ref: (1, H)   hidden.bias
    # w2_ref: (1, H)   linear.weight (already a row)
    # b2_ref: (1, 1)   linear.bias
    # y_ref : (1, BB)  lane-dense output row (batch on the lane axis)
    x = x_ref[...].astype(jnp.float32)  # f32 VPU/EUP math everywhere (v5e-safe)

    # Layer 1 on the MXU.
    h = jnp.dot(x, w1_ref[...], preferred_element_type=jnp.float32) + b1_ref[...]
    h = jax.nn.sigmoid(h)  # (BB, H)

    # Layer 2: contract H as  w2 (1,H) . h^T (H,BB) -> (1, BB).
    # Same math as sum(h * w2, -1) but yields the lane-dense row directly, so the store is a
    # dense (1, BB) write instead of a masked (BB, 1) column. FLOPs are negligible either way.
    y = lax.dot_general(
        w2_ref[...], h, (((1,), (1,)), ((), ())),
        preferred_element_type=jnp.float32,
    ) + b2_ref[...]
    y_ref[...] = jax.nn.sigmoid(y)


def mlp_forward(x, w1, b1, w2, b2, *, block_batch=1024):
    """sigmoid(sigmoid(x @ w1 + b1) @ w2.T + b2)  -> (N, 1) float32.

    x : (N, D) f32 or bf16
    w1: (D, H)  (= hidden.weight.T),  b1: (H,) or (1, H)
    w2: (1, H)  (= linear.weight),    b2: scalar-like
    """
    N, D = x.shape
    H = w1.shape[1]

    w1 = jnp.asarray(w1, jnp.float32)
    b1 = jnp.asarray(b1, jnp.float32).reshape(1, H)
    w2 = jnp.asarray(w2, jnp.float32).reshape(1, H)
    b2 = jnp.asarray(b2, jnp.float32).reshape(1, 1)

    # Batch tile: large, lane-aligned (multiple of 128); pad the batch instead of asserting.
    bb = min(block_batch, _round_up(N, 128))
    bb = _round_up(bb, 128)
    n_pad = _round_up(N, bb)
    if n_pad != N:
        x = jnp.pad(x, ((0, n_pad - N), (0, 0)))

    grid = (n_pad // bb,)
    out = pl.pallas_call(
        mlp_kernel,
        out_shape=jax.ShapeDtypeStruct((1, n_pad), jnp.float32),
        grid_spec=pltpu.PrefetchScalarGridSpec(
            num_scalar_prefetch=0,
            grid=grid,
            in_specs=[
                pl.BlockSpec((bb, D), lambda i: (i, 0)),   # x tile (only per-step stream)
                pl.BlockSpec((D, H), lambda i: (0, 0)),    # W1 (grid-invariant)
                pl.BlockSpec((1, H), lambda i: (0, 0)),    # b1
                pl.BlockSpec((1, H), lambda i: (0, 0)),    # w2 row
                pl.BlockSpec((1, 1), lambda i: (0, 0)),    # b2
            ],
            out_specs=pl.BlockSpec((1, bb), lambda i: (0, i)),  # lane-dense output row
        ),
        compiler_params=pltpu.CompilerParams(
            dimension_semantics=("parallel",),  # lets v7x shard grid steps across both TCs
        ),
    )(x, w1, b1, w2, b2)

    return out[0, :N].reshape(N, 1)


if __name__ == "__main__":
    # Synthetic sizes: the CSV-derived feature dim D is fixed to 32 here; hidden H = 10.
    N, D, H = 2048, 32, 10

    key = jax.random.PRNGKey(0)
    kx, kw1, kb1, kw2, kb2 = jax.random.split(key, 5)

    x = jax.random.normal(kx, (N, D), dtype=jnp.float32)

    # Deterministic parameter init (Linear layer shapes; values arbitrary but fixed).
    w1 = jax.random.normal(kw1, (D, H), dtype=jnp.float32) * 0.1   # hidden.weight^T
    b1 = jax.random.normal(kb1, (H,), dtype=jnp.float32) * 0.1     # hidden.bias
    w2 = jax.random.normal(kw2, (1, H), dtype=jnp.float32) * 0.1   # linear.weight
    b2 = jax.random.normal(kb2, (1,), dtype=jnp.float32) * 0.1     # linear.bias

    # f32 path (grid of 2 steps at block_batch=1024).
    y = mlp_forward(x, w1, b1, w2, b2, block_batch=1024)
    jax.block_until_ready(y)

    # Reference in plain JAX.
    h_ref = jax.nn.sigmoid(x @ w1 + b1.reshape(1, H))
    y_ref = jax.nn.sigmoid(h_ref @ w2.reshape(1, H).T + b2.reshape(1, 1))
    assert y.shape == (N, 1)
    assert jnp.allclose(y, y_ref, atol=1e-5), "f32 mismatch vs reference"

    # Ragged batch (remainder handled via padding; single grid step).
    n2 = 200
    y2 = mlp_forward(x[:n2], w1, b1, w2, b2, block_batch=1024)
    jax.block_until_ready(y2)
    assert jnp.allclose(y2, y_ref[:n2], atol=1e-5), "ragged-batch mismatch vs reference"

    # bf16 input streaming (halves HBM bytes on the dominant x stream); f32 compute inside.
    y_bf16 = mlp_forward(x.astype(jnp.bfloat16), w1, b1, w2, b2, block_batch=1024)
    jax.block_until_ready(y_bf16)
    assert jnp.allclose(y_bf16, y_ref, atol=2e-2), "bf16 mismatch vs reference"

    print("KERNEL_OK")
</pallas_src>

<mosaic_0001>
module attributes {stable_mosaic.version = 11 : i64} {
  func.func @mlp_kernel(%arg0: i32, %arg1: memref<1024x32xf32, #tpu.memory_space<vmem>>, %arg2: memref<32x10xf32, #tpu.memory_space<vmem>>, %arg3: memref<1x10xf32, #tpu.memory_space<vmem>>, %arg4: memref<1x10xf32, #tpu.memory_space<vmem>>, %arg5: memref<1x1xf32, #tpu.memory_space<vmem>>, %arg6: memref<1x1024xf32, #tpu.memory_space<vmem>>) attributes {dimension_semantics = [#tpu.dimension_semantics<parallel>], iteration_bounds = array<i64: 2>, scalar_prefetch = 0 : i64, scratch_operands = 0 : i64, tpu.core_type = #tpu.core_type<tc>, window_params = [{transform_indices = @transform_0, window_bounds = array<i64: 1024, 32>}, {pipeline_mode = #tpu.pipeline_mode<synchronous>, transform_indices = @transform_1, window_bounds = array<i64: 32, 10>}, {pipeline_mode = #tpu.pipeline_mode<synchronous>, transform_indices = @transform_2, window_bounds = array<i64: 1, 10>}, {pipeline_mode = #tpu.pipeline_mode<synchronous>, transform_indices = @transform_3, window_bounds = array<i64: 1, 10>}, {pipeline_mode = #tpu.pipeline_mode<synchronous>, transform_indices = @transform_4, window_bounds = array<i64: 1, 1>}, {transform_indices = @transform_5, window_bounds = array<i64: 1, 1024>}]} {
    %c0 = arith.constant 0 : index
    %c0_0 = arith.constant 0 : index
    %0 = vector.load %arg1[%c0, %c0_0] : memref<1024x32xf32, #tpu.memory_space<vmem>>, vector<1024x32xf32>
    %c0_1 = arith.constant 0 : index
    %c0_2 = arith.constant 0 : index
    %1 = vector.load %arg2[%c0_1, %c0_2] : memref<32x10xf32, #tpu.memory_space<vmem>>, vector<32x10xf32>
    %cst = arith.constant dense<0.000000e+00> : vector<1024x10xf32>
    %2 = tpu.matmul %0, %1, %cst {dimension_numbers = #tpu.dot_dimension_numbers<[1], [0], [0], [1], [0, 0, 1, 1], [], []>} : vector<1024x32xf32>, vector<32x10xf32>, vector<1024x10xf32> -> vector<1024x10xf32>
    %c0_3 = arith.constant 0 : index
    %c0_4 = arith.constant 0 : index
    %3 = vector.load %arg3[%c0_3, %c0_4] : memref<1x10xf32, #tpu.memory_space<vmem>>, vector<1x10xf32>
    %4 = vector.broadcast %3 : vector<1x10xf32> to vector<1024x10xf32>
    %5 = arith.addf %2, %4 : vector<1024x10xf32>
    %6 = arith.negf %5 : vector<1024x10xf32>
    %7 = math.exp %6 : vector<1024x10xf32>
    %cst_5 = arith.constant 1.000000e+00 : f32
    %8 = vector.broadcast %cst_5 : f32 to vector<1024x10xf32>
    %9 = arith.addf %8, %7 : vector<1024x10xf32>
    %10 = arith.divf %8, %9 : vector<1024x10xf32>
    %c0_6 = arith.constant 0 : index
    %c0_7 = arith.constant 0 : index
    %11 = vector.load %arg4[%c0_6, %c0_7] : memref<1x10xf32, #tpu.memory_space<vmem>>, vector<1x10xf32>
    %cst_8 = arith.constant dense<0.000000e+00> : vector<1x1024xf32>
    %12 = tpu.matmul %11, %10, %cst_8 {dimension_numbers = #tpu.dot_dimension_numbers<[1], [1], [0], [0], [0, 0, 1, 0], [], []>} : vector<1x10xf32>, vector<1024x10xf32>, vector<1x1024xf32> -> vector<1x1024xf32>
    %c0_9 = arith.constant 0 : index
    %c0_10 = arith.constant 0 : index
    %13 = vector.load %arg5[%c0_9, %c0_10] : memref<1x1xf32, #tpu.memory_space<vmem>>, vector<1x1xf32>
    %14 = vector.broadcast %13 : vector<1x1xf32> to vector<1x1024xf32>
    %15 = arith.addf %12, %14 : vector<1x1024xf32>
    %16 = arith.negf %15 : vector<1x1024xf32>
    %17 = math.exp %16 : vector<1x1024xf32>
    %cst_11 = arith.constant 1.000000e+00 : f32
    %18 = vector.broadcast %cst_11 : f32 to vector<1x1024xf32>
    %19 = arith.addf %18, %17 : vector<1x1024xf32>
    %20 = arith.divf %18, %19 : vector<1x1024xf32>
    %c0_12 = arith.constant 0 : index
    %c0_13 = arith.constant 0 : index
    %21 = vector.load %arg6[%c0_12, %c0_13] : memref<1x1024xf32, #tpu.memory_space<vmem>>, vector<1x1024xf32>
    tpu.vector_store %arg6[%c0_12, %c0_13], %20 {strides = array<i32>} : memref<1x1024xf32, #tpu.memory_space<vmem>>, vector<1x1024xf32>,
    return
  }
  func.func @transform_0(%arg0: i32) -> (i32, i32) {
    %c0_i32 = arith.constant 0 : i32
    %c0_i32_0 = arith.constant 0 : i32
    return %arg0, %c0_i32 : i32, i32
  }
  func.func @transform_1(%arg0: i32) -> (i32, i32) {
    %c0_i32 = arith.constant 0 : i32
    %c0_i32_0 = arith.constant 0 : i32
    %c0_i32_1 = arith.constant 0 : i32
    return %c0_i32, %c0_i32_0 : i32, i32
  }
  func.func @transform_2(%arg0: i32) -> (i32, i32) {
    %c0_i32 = arith.constant 0 : i32
    %c0_i32_0 = arith.constant 0 : i32
    %c0_i32_1 = arith.constant 0 : i32
    return %c0_i32, %c0_i32_0 : i32, i32
  }
  func.func @transform_3(%arg0: i32) -> (i32, i32) {
    %c0_i32 = arith.constant 0 : i32
    %c0_i32_0 = arith.constant 0 : i32
    %c0_i32_1 = arith.constant 0 : i32
    return %c0_i32, %c0_i32_0 : i32, i32
  }
  func.func @transform_4(%arg0: i32) -> (i32, i32) {
    %c0_i32 = arith.constant 0 : i32
    %c0_i32_0 = arith.constant 0 : i32
    %c0_i32_1 = arith.constant 0 : i32
    return %c0_i32, %c0_i32_0 : i32, i32
  }
  func.func @transform_5(%arg0: i32) -> (i32, i32) {
    %c0_i32 = arith.constant 0 : i32
    %c0_i32_0 = arith.constant 0 : i32
    return %c0_i32, %arg0 : i32, i32
  }
}

</mosaic_0001>

<bundles_post_ra>
// kernel: tpu_custom_call.1
= control target key start
LH: loop header
LB: loop body
LE: loop exit
PB: predicated region body
PF: predicated region fallthrough
CT: control target
= control target key end

     0   :  { %s5913_s0 = inlined_call_operand.vmem [shape: f32[2048,32], index: 0, kind: input, shape index: {}]   ;;  %s5914_s1 = inlined_call_operand.vmem [shape: f32[32,10], index: 1, kind: input, shape index: {}]   ;;  %s5915_s2 = inlined_call_operand.vmem [shape: f32[1,10], index: 2, kind: input, shape index: {}]   ;;  %s5916_s3 = inlined_call_operand.vmem [shape: f32[1,10], index: 3, kind: input, shape index: {}]   ;;  %s5917_s4 = inlined_call_operand.<no memory space> [shape: f32[1,1], index: 4, kind: input, shape index: {}]   ;;  %s5918_s5 = inlined_call_operand.hbm [shape: f32[1,2048], index: 5, kind: output, shape index: {}]  }
   0x1   :  { %v10_v0 = vstv %s5917_s4 }
   0x2   :  { %11 = vst [vmem:[#allocation2] sm:$0x1] %v10_v0 }
   0x3   :  { %12 = vsyncpa [#allocation4], 0 }
   0x4   :  { %14 = vsyncpa [#allocation4 + $0x1], 0  ;;  %s4857_s20 = smov 0   ;;  %s4859_s21 = smov 0  }
   0x5   :  { %s4861_s22 = smov 0   ;;  %s4863_s23 = smov 0  }
   0x6 LB: > { %s3088_s4 = sadd.s32 4294967295, %s4819_s23   ;;  %s3089_s24 = sadd.s32 4294967294, %s4819_s23   ;;  %s4819_s23 = sphi %s4863_s23, %s5926_s23   ;;  %s4815_s22 = sphi %s4861_s22, %s5925_s22   ;;  %s4811_s21 = sphi %s4859_s21, %s5924_s21   ;;  %s4807_s20 = sphi %s4857_s20, %s5923_s20  }
   0x7   : > { %s4880_s25 = sadd.s32 1, %s4819_s23   ;;  %s137_s26 = sadd.s32 1, %s4815_s22 }
   0x8   : > { %s134_s27 = ssub.s32 %s4819_s23, %s4880_s25  ;;  %p147_p0 = scmp.ne.s32.totalorder %s4815_s22, %s4811_s21 }
   0x9   : > { %p135_p1 = scmp.eq.s32.totalorder %s134_s27, 0  ;;  %p148_p2 = scmp.eq.s32.totalorder %s3088_s4, 1 }
   0xa   : > { %p153_p3 = scmp.ne.s32.totalorder %s4811_s21, %s4807_s20  ;;  %p154_p4 = scmp.eq.s32.totalorder %s3089_s24, 1 }
   0xb   : > { %s4890_s28 = scalar_select %p135_p1, %s4815_s22, %s137_s26  }
   0xc   : > { %p4892_p5 = por %p148_p2, %p147_p0  ;;  %p4896_p6 = por %p154_p4, %p153_p3 }
   0xd   : > { %p3092_p7 = scmp.ge.s32.totalorder %s4819_s23, 1  ;;  %p193_p8 = scmp.lt.s32.totalorder %s4819_s23, 3 }
   0xf   : > { %p194_p9 = pnand %p3092_p7, %p193_p8 }
  0x10   : > { %v356_v1 = vld [vmem:[%s5914_s1] sm:$0xff] (!%p194_p9)  ;;  %v357_v2 = vld [vmem:[%s5914_s1 + $0x8] sm:$0xff] (!%p194_p9)  ;;  %v358_v3 = vld [vmem:[%s5914_s1 + $0x10] sm:$0xff] (!%p194_p9)  ;;  %s4911_s12 = sshll.u32 (!%p194_p9), %s3088_s4, 7  ;;  %vm367_vm0 = vcmask (!%p194_p9), 261120   ;;  %vm2236_vm1 = vcmask (!%p194_p9), 80896  }
  0x11   : > { %197 = sbr.rel (%p194_p9) target bundleno = 829 (0x33d), region = 40  ;;  %v3967_v4 = vpack.c.bf16 (!%p194_p9), %v357_v2, %v356_v1  ;;  %v359_v5 = vld [vmem:[%s5914_s1 + $0x18] sm:$0xff] (!%p194_p9)  ;;  %p222_p10 = scmp.lt.s32.totalorder (!%p194_p9), %s4911_s12, 255  ;;  %vm5270_vm2 = vmpackc.low (!%p194_p9), %vm2236_vm1, %vm2236_vm1 }
  0x12   : > { %v3971_v6 = vpack.c.bf16 (!%p194_p9), %v359_v5, %v358_v3  ;;  %s5871_s24 = scalar_lea.hbm (!%p194_p9), %s5918_s5, %s4911_s12  ;;  %s4823_s6 = smov (!%p194_p9), [#allocation3]  }
  0x13   : > { %3968 = vmatprep.subr.bf16.mxu0 (!%p194_p9), %v3967_v4  ;;  %s4761_s7 = sshll.u32 (!%p194_p9), %s4823_s6, 4  ;;  %s4762_s7 = int_to_ptr.vmem [resolvable:$false] %s4761_s7 }
  0x14   : > { %3970 = vmatpush3.bf16.msra.mxu0 (!%p194_p9), %v3967_v4  ;;  %s4763_s8 = scalar_lea.vmem (!%p194_p9), %s4762_s7, 256 }
  0x15   : > { %3972 = vmatprep.subr.bf16.mxu0 (!%p194_p9), %v3971_v6 }
  0x18   : > { %s223_s15 = scalar_select %p222_p10, %s4911_s12, 255  ;;  %3974 = vmatpush3.bf16.msra.mxu0 %v3971_v6 }
  0x1a   : > { %s3095_s16 = sshll.u32 %s223_s15, 3  ;;  %s218_s15 = sand.u32 1, %s4811_s21  }
  0x1b   : > { %s4921_s19 = scalar_lea.vmem %s5913_s0, %s3095_s16  ;;  %s3093_s16 = sshll.u32 %s218_s15, 3 }
  0x1c   : > { %v228_v7 = vld [vmem:[%s4921_s19] sm:$0xff]  ;;  %v229_v8 = vld [vmem:[%s4921_s19 + $0x8] sm:$0xff]  ;;  %v230_v9 = vld [vmem:[%s4921_s19 + $0x10] sm:$0xff]  ;;  %s220_s17 = scalar_lea.vmem [#allocation3], %s3093_s16  ;;  %s3016_s26 = scalar_lea.sflag [#allocation4], %s218_s15 }
  0x1d   : > { %3775 = vmatprep.mubr.msk.f32.mxu0 %vm367_vm0, %v228_v7  ;;  %v231_v10 = vld [vmem:[%s4921_s19 + $0x18] sm:$0xff]  ;;  %v232_v11 = vld [vmem:[%s4921_s19 + $0x20] sm:$0xff]  ;;  %v233_v12 = vld [vmem:[%s4921_s19 + $0x28] sm:$0xff]  ;;  %s3030_s18 = sshll.u32 %s220_s17, 4  ;;  %s5873_s18 = int_to_ptr.vmem [resolvable:$true] %s3030_s18 }
  0x1e   : > { %3776 = vmatmul.mubr.msk.f32.vlgmr.msra.gmra.mrb[0].mxu0 %vm367_vm0, %v229_v8  ;;  %v234_v13 = vld [vmem:[%s4921_s19 + $0x30] sm:$0xff]  ;;  %v235_v14 = vld [vmem:[%s4921_s19 + $0x38] sm:$0xff]  ;;  %v236_v15 = vld [vmem:[%s4921_s19 + $0x40] sm:$0xff]  ;;  %s4757_s27 = scalar_lea.vmem %s5873_s18, 128  ;;  %p4764_p0 = scmp.lt.s32.totalorder %s5873_s18, %s4762_s7 }
  0x1f   : > { %3778 = vmatprep.mubr.msk.f32.mxu0 %vm367_vm0, %v230_v9  ;;  %v237_v16 = vld [vmem:[%s4921_s19 + $0x48] sm:$0xff]  ;;  %v238_v17 = vld [vmem:[%s4921_s19 + $0x50] sm:$0xff]  ;;  %v239_v18 = vld [vmem:[%s4921_s19 + $0x58] sm:$0xff]  ;;  %p4758_p11 = scmp.ne.s32.totalorder %s5873_s18, %s4757_s27  ;;  %p4765_p1 = scmp.lt.s32.totalorder %s4763_s8, %s4757_s27 }
  0x20   : > { %v240_v19 = vld [vmem:[%s4921_s19 + $0x60] sm:$0xff]  ;;  %v241_v20 = vld [vmem:[%s4921_s19 + $0x68] sm:$0xff]  ;;  %v242_v21 = vld [vmem:[%s4921_s19 + $0x70] sm:$0xff] }
  0x21   : > { %v243_v22 = vld [vmem:[%s4921_s19 + $0x78] sm:$0xff]  ;;  %v244_v23 = vld [vmem:[%s4921_s19 + $0x80] sm:$0xff]  ;;  %v245_v24 = vld [vmem:[%s4921_s19 + $0x88] sm:$0xff]  ;;  %p4759_p12 = pnand %p4758_p11, %p4892_p5  ;;  %p4766_p2 = por %p4765_p1, %p4764_p0 }
  0x22   : > { %3779 = vmatmul.mubr.msk.f32.gmra.mrb[2].mxu0 %vm367_vm0, %v231_v10  ;;  %v246_v25 = vld [vmem:[%s4921_s19 + $0x90] sm:$0xff]  ;;  %v247_v26 = vld [vmem:[%s4921_s19 + $0x98] sm:$0xff]  ;;  %v248_v27 = vld [vmem:[%s4921_s19 + $0xa0] sm:$0xff] }
  0x23   : > { %3781 = vmatprep.mubr.msk.f32.mxu0 %vm367_vm0, %v232_v11  ;;  %v249_v28 = vld [vmem:[%s4921_s19 + $0xa8] sm:$0xff]  ;;  %v250_v29 = vld [vmem:[%s4921_s19 + $0xb0] sm:$0xff]  ;;  %v251_v30 = vld [vmem:[%s4921_s19 + $0xb8] sm:$0xff]  ;;  %p4760_p13 = pneg %p4759_p12 }
  0x24   : > { %v252_v31 = vld [vmem:[%s4921_s19 + $0xc0] sm:$0xff]  ;;  %v253_v32 = vld [vmem:[%s4921_s19 + $0xc8] sm:$0xff]  ;;  %v254_v33 = vld [vmem:[%s4921_s19 + $0xd0] sm:$0xff] }
  0x25   : > { %v255_v34 = vld [vmem:[%s4921_s19 + $0xd8] sm:$0xff]  ;;  %v256_v35 = vld [vmem:[%s4921_s19 + $0xe0] sm:$0xff]  ;;  %v257_v36 = vld [vmem:[%s4921_s19 + $0xe8] sm:$0xff]  ;;  %p4767_p3 = pnand %p4766_p2, %p4760_p13 }
  0x26   : > { %3782 = vmatmul.mubr.msk.f32.gmra.mrb[4].mxu0 %vm367_vm0, %v233_v12  ;;  %v258_v37 = vld [vmem:[%s4921_s19 + $0xf0] sm:$0xff]  ;;  %v259_v38 = vld [vmem:[%s4921_s19 + $0xf8] sm:$0xff]  ;;  %v260_v39 = vld [vmem:[%s4921_s19 + $0x100] sm:$0xff] }
  0x27   : > { %3784 = vmatprep.mubr.msk.f32.mxu0 %vm367_vm0, %v234_v13  ;;  %v261_v40 = vld [vmem:[%s4921_s19 + $0x108] sm:$0xff]  ;;  %v262_v41 = vld [vmem:[%s4921_s19 + $0x110] sm:$0xff]  ;;  %v263_v42 = vld [vmem:[%s4921_s19 + $0x118] sm:$0xff] }
  0x28   : > { %v264_v43 = vld [vmem:[%s4921_s19 + $0x120] sm:$0xff]  ;;  %v265_v44 = vld [vmem:[%s4921_s19 + $0x128] sm:$0xff]  ;;  %v266_v45 = vld [vmem:[%s4921_s19 + $0x130] sm:$0xff] }
  0x29   : > { %v267_v46 = vld [vmem:[%s4921_s19 + $0x138] sm:$0xff]  ;;  %v268_v47 = vld [vmem:[%s4921_s19 + $0x140] sm:$0xff]  ;;  %v269_v48 = vld [vmem:[%s4921_s19 + $0x148] sm:$0xff] }
  0x2a   : > { %3785 = vmatmul.mubr.msk.f32.gmra.mrb[6].mxu0 %vm367_vm0, %v235_v14  ;;  %v270_v49 = vld [vmem:[%s4921_s19 + $0x150] sm:$0xff]  ;;  %v271_v50 = vld [vmem:[%s4921_s19 + $0x158] sm:$0xff]  ;;  %v272_v51 = vld [vmem:[%s4921_s19 + $0x160] sm:$0xff] }
  0x2b   : > { %3787 = vmatprep.mubr.msk.f32.mxu0 %vm367_vm0, %v236_v15  ;;  %v273_v52 = vld [vmem:[%s4921_s19 + $0x168] sm:$0xff]  ;;  %v274_v53 = vld [vmem:[%s4921_s19 + $0x170] sm:$0xff]  ;;  %v275_v54 = vld [vmem:[%s4921_s19 + $0x178] sm:$0xff] }
  0x2c   : > { %v276_v55 = vld [vmem:[%s4921_s19 + $0x180] sm:$0xff]  ;;  %v277_v56 = vld [vmem:[%s4921_s19 + $0x188] sm:$0xff]  ;;  %v278_v57 = vld [vmem:[%s4921_s19 + $0x190] sm:$0xff] }
  0x2d   : > { %v279_v58 = vld [vmem:[%s4921_s19 + $0x198] sm:$0xff]  ;;  %v280_v59 = vld [vmem:[%s4921_s19 + $0x1a0] sm:$0xff]  ;;  %v281_v60 = vld [vmem:[%s4921_s19 + $0x1a8] sm:$0xff] }
  0x2e   : > { %3788 = vmatmul.mubr.msk.f32.gmra.mrb[8].mxu0 %vm367_vm0, %v237_v16  ;;  %v282_v61 = vld [vmem:[%s4921_s19 + $0x1b0] sm:$0xff]  ;;  %v283_v62 = vld [vmem:[%s4921_s19 + $0x1b8] sm:$0xff]  ;;  %v284_v63 = vld [vmem:[%s4921_s19 + $0x1c0] sm:$0xff] }
  0x2f   : > { %3790 = vmatprep.mubr.msk.f32.mxu0 %vm367_vm0, %v238_v17  ;;  %v285_v0 = vld [vmem:[%s4921_s19 + $0x1c8] sm:$0xff]  ;;  %v286_v1 = vld [vmem:[%s4921_s19 + $0x1d0] sm:$0xff]  ;;  %v287_v2 = vld [vmem:[%s4921_s19 + $0x1d8] sm:$0xff] }
  0x30   : > { %v288_v3 = vld [vmem:[%s4921_s19 + $0x1e0] sm:$0xff]  ;;  %v289_v4 = vld [vmem:[%s4921_s19 + $0x1e8] sm:$0xff]  ;;  %v290_v5 = vld [vmem:[%s4921_s19 + $0x1f0] sm:$0xff] }
  0x31   : > { %v291_v6 = vld [vmem:[%s4921_s19 + $0x1f8] sm:$0xff]  ;;  %v292_v7 = vld [vmem:[%s4921_s19 + $0x200] sm:$0xff]  ;;  %v293_v8 = vld [vmem:[%s4921_s19 + $0x208] sm:$0xff] }
  0x32   : > { %3791 = vmatmul.mubr.msk.f32.gmra.mrb[10].mxu0 %vm367_vm0, %v239_v18  ;;  %v294_v9 = vld [vmem:[%s4921_s19 + $0x210] sm:$0xff]  ;;  %v295_v10 = vld [vmem:[%s4921_s19 + $0x218] sm:$0xff]  ;;  %v296_v11 = vld [vmem:[%s4921_s19 + $0x220] sm:$0xff] }
  0x33   : > { %3793 = vmatprep.mubr.msk.f32.mxu0 %vm367_vm0, %v240_v19  ;;  %v297_v12 = vld [vmem:[%s4921_s19 + $0x228] sm:$0xff]  ;;  %v298_v13 = vld [vmem:[%s4921_s19 + $0x230] sm:$0xff]  ;;  %v299_v14 = vld [vmem:[%s4921_s19 + $0x238] sm:$0xff] }
  0x34   : > { %v300_v15 = vld [vmem:[%s4921_s19 + $0x240] sm:$0xff]  ;;  %v301_v16 = vld [vmem:[%s4921_s19 + $0x248] sm:$0xff]  ;;  %v302_v17 = vld [vmem:[%s4921_s19 + $0x250] sm:$0xff] }
  0x35   : > { %v303_v18 = vld [vmem:[%s4921_s19 + $0x258] sm:$0xff]  ;;  %v304_v19 = vld [vmem:[%s4921_s19 + $0x260] sm:$0xff] }
  0x36   : > { %3794 = vmatmul.mubr.msk.f32.gmra.mrb[12].mxu0 %vm367_vm0, %v241_v20  ;;  %v305_v20 = vld [vmem:[%s4921_s19 + $0x268] sm:$0xff] }
  0x37   : > { %3796 = vmatprep.mubr.msk.f32.mxu0 %vm367_vm0, %v242_v21  ;;  %v306_v21 = vld [vmem:[%s4921_s19 + $0x270] sm:$0xff] }
  0x3a   : > { %3797 = vmatmul.mubr.msk.f32.gmra.mrb[14].mxu0 %vm367_vm0, %v243_v22  ;;  %v307_v22 = vld [vmem:[%s4921_s19 + $0x278] sm:$0xff] }
  0x3b   : > { %3799 = vmatprep.mubr.msk.f32.mxu0 %vm367_vm0, %v244_v23  ;;  %v308_v23 = vld [vmem:[%s4921_s19 + $0x280] sm:$0xff] }
  0x3e   : > { %3800 = vmatmul.mubr.msk.f32.gmra.mrb[16].mxu0 %vm367_vm0, %v245_v24  ;;  %v309_v24 = vld [vmem:[%s4921_s19 + $0x288] sm:$0xff] }
  0x3f   : > { %3802 = vmatprep.mubr.msk.f32.mxu0 %vm367_vm0, %v246_v25  ;;  %v310_v25 = vld [vmem:[%s4921_s19 + $0x290] sm:$0xff] }
  0x42   : > { %3803 = vmatmul.mubr.msk.f32.gmra.mrb[18].mxu0 %vm367_vm0, %v247_v26  ;;  %v311_v26 = vld [vmem:[%s4921_s19 + $0x298] sm:$0xff] }
  0x43   : > { %3805 = vmatprep.mubr.msk.f32.mxu0 %vm367_vm0, %v248_v27  ;;  %v312_v27 = vld [vmem:[%s4921_s19 + $0x2a0] sm:$0xff] }
  0x46   : > { %3806 = vmatmul.mubr.msk.f32.gmra.mrb[20].mxu0 %vm367_vm0, %v249_v28  ;;  %v313_v28 = vld [vmem:[%s4921_s19 + $0x2a8] sm:$0xff] }
  0x47   : > { %3808 = vmatprep.mubr.msk.f32.mxu0 %vm367_vm0, %v250_v29  ;;  %v314_v29 = vld [vmem:[%s4921_s19 + $0x2b0] sm:$0xff] }
  0x4a   : > { %3809 = vmatmul.mubr.msk.f32.gmra.mrb[22].mxu0 %vm367_vm0, %v251_v30  ;;  %v315_v30 = vld [vmem:[%s4921_s19 + $0x2b8] sm:$0xff] }
  0x4b   : > { %3811 = vmatprep.mubr.msk.f32.mxu0 %vm367_vm0, %v252_v31  ;;  %v316_v31 = vld [vmem:[%s4921_s19 + $0x2c0] sm:$0xff] }
  0x4e   : > { %3812 = vmatmul.mubr.msk.f32.gmra.mrb[24].mxu0 %vm367_vm0, %v253_v32  ;;  %v317_v32 = vld [vmem:[%s4921_s19 + $0x2c8] sm:$0xff] }
  0x4f   : > { %3814 = vmatprep.mubr.msk.f32.mxu0 %vm367_vm0, %v254_v33  ;;  %v318_v33 = vld [vmem:[%s4921_s19 + $0x2d0] sm:$0xff] }
  0x52   : > { %3815 = vmatmul.mubr.msk.f32.gmra.mrb[26].mxu0 %vm367_vm0, %v255_v34  ;;  %v319_v34 = vld [vmem:[%s4921_s19 + $0x2d8] sm:$0xff] }
  0x53   : > { %3817 = vmatprep.mubr.msk.f32.mxu0 %vm367_vm0, %v256_v35  ;;  %v320_v35 = vld [vmem:[%s4921_s19 + $0x2e0] sm:$0xff] }
  0x56   : > { %3818 = vmatmul.mubr.msk.f32.gmra.mrb[28].mxu0 %vm367_vm0, %v257_v36  ;;  %v321_v36 = vld [vmem:[%s4921_s19 + $0x2e8] sm:$0xff] }
  0x57   : > { %3820 = vmatprep.mubr.msk.f32.mxu0 %vm367_vm0, %v258_v37  ;;  %v322_v37 = vld [vmem:[%s4921_s19 + $0x2f0] sm:$0xff] }
  0x5a   : > { %3821 = vmatmul.mubr.msk.f32.gmra.mrb[30].mxu0 %vm367_vm0, %v259_v38  ;;  %v323_v38 = vld [vmem:[%s4921_s19 + $0x2f8] sm:$0xff] }
  0x5b   : > { %3823 = vmatprep.mubr.msk.f32.mxu0 %vm367_vm0, %v260_v39  ;;  %v324_v39 = vld [vmem:[%s4921_s19 + $0x300] sm:$0xff] }
  0x5e   : > { %3824 = vmatmul.mubr.msk.f32.gmra.mrb[32].mxu0 %vm367_vm0, %v261_v40  ;;  %v325_v40 = vld [vmem:[%s4921_s19 + $0x308] sm:$0xff] }
  0x5f   : > { %3826 = vmatprep.mubr.msk.f32.mxu0 %vm367_vm0, %v262_v41  ;;  %v326_v41 = vld [vmem:[%s4921_s19 + $0x310] sm:$0xff] }
  0x62   : > { %3827 = vmatmul.mubr.msk.f32.gmra.mrb[34].mxu0 %vm367_vm0, %v263_v42  ;;  %v327_v42 = vld [vmem:[%s4921_s19 + $0x318] sm:$0xff] }
  0x63   : > { %3829 = vmatprep.mubr.msk.f32.mxu0 %vm367_vm0, %v264_v43  ;;  %v328_v43 = vld [vmem:[%s4921_s19 + $0x320] sm:$0xff] }
  0x66   : > { %3830 = vmatmul.mubr.msk.f32.gmra.mrb[36].mxu0 %vm367_vm0, %v265_v44  ;;  %v329_v44 = vld [vmem:[%s4921_s19 + $0x328] sm:$0xff] }
  0x67   : > { %3832 = vmatprep.mubr.msk.f32.mxu0 %vm367_vm0, %v266_v45  ;;  %v330_v45 = vld [vmem:[%s4921_s19 + $0x330] sm:$0xff] }
  0x6a   : > { %3833 = vmatmul.mubr.msk.f32.gmra.mrb[38].mxu0 %vm367_vm0, %v267_v46  ;;  %v331_v46 = vld [vmem:[%s4921_s19 + $0x338] sm:$0xff] }
  0x6b   : > { %3835 = vmatprep.mubr.msk.f32.mxu0 %vm367_vm0, %v268_v47  ;;  %v332_v47 = vld [vmem:[%s4921_s19 + $0x340] sm:$0xff] }
  0x6e   : > { %3836 = vmatmul.mubr.msk.f32.gmra.mrb[40].mxu0 %vm367_vm0, %v269_v48  ;;  %v333_v48 = vld [vmem:[%s4921_s19 + $0x348] sm:$0xff] }
  0x6f   : > { %3838 = vmatprep.mubr.msk.f32.mxu0 %vm367_vm0, %v270_v49  ;;  %v334_v49 = vld [vmem:[%s4921_s19 + $0x350] sm:$0xff] }
  0x72   : > { %3839 = vmatmul.mubr.msk.f32.gmra.mrb[42].mxu0 %vm367_vm0, %v271_v50  ;;  %v5139_v50 = vld [vmem:[%s5915_s2] ss:$0 sm:$0xff] }
  0x73   : > { %3841 = vmatprep.mubr.msk.f32.mxu0 %vm367_vm0, %v272_v51  ;;  %v335_v51 = vld [vmem:[%s4921_s19 + $0x358] sm:$0xff] }
  0x76   : > { %3842 = vmatmul.mubr.msk.f32.gmra.mrb[44].mxu0 %vm367_vm0, %v273_v52  ;;  %v336_v52 = vld [vmem:[%s4921_s19 + $0x360] sm:$0xff] }
  0x77   : > { %3844 = vmatprep.mubr.msk.f32.mxu0 %vm367_vm0, %v274_v53 }
  0x7a   : > { %3845 = vmatmul.mubr.msk.f32.gmra.mrb[46].mxu0 %vm367_vm0, %v275_v54 }
  0x7b   : > { %3847 = vmatprep.mubr.msk.f32.mxu0 %vm367_vm0, %v276_v55 }
  0x7e   : > { %3848 = vmatmul.mubr.msk.f32.gmra.mrb[48].mxu0 %vm367_vm0, %v277_v56  ;;  %v2225_v56 = vld [vmem:[%s5916_s3] sm:$0x1] }
  0x7f   : > { %3850 = vmatprep.mubr.msk.f32.mxu0 %vm367_vm0, %v278_v57  ;;  %3663 = vmatprep.mubr.msk.f32.mxu1 %vm2236_vm1, %v2225_v56 }
  0x82   : > { %3851 = vmatmul.mubr.msk.f32.gmra.mrb[50].mxu0 %vm367_vm0, %v279_v58  ;;  %v337_v58 = vld [vmem:[%s4921_s19 + $0x368] sm:$0xff] }
  0x83   : > { %3853 = vmatprep.mubr.msk.f32.mxu0 %vm367_vm0, %v280_v59 }
  0x86   : > { %3854 = vmatmul.mubr.msk.f32.gmra.mrb[52].mxu0 %vm367_vm0, %v281_v60  ;;  %v338_v60 = vld [vmem:[%s4921_s19 + $0x370] sm:$0xff] }
  0x87   : > { %3856 = vmatprep.mubr.msk.f32.mxu0 %vm367_vm0, %v282_v61 }
  0x8a   : > { %3857 = vmatmul.mubr.msk.f32.gmra.mrb[54].mxu0 %vm367_vm0, %v283_v62 }
  0x8b   : > { %3859 = vmatprep.mubr.msk.f32.mxu0 %vm367_vm0, %v284_v63 }
  0x8e   : > { %3860 = vmatmul.mubr.msk.f32.gmra.mrb[56].mxu0 %vm367_vm0, %v285_v0 }
  0x8f   : > { %3862 = vmatprep.mubr.msk.f32.mxu0 %vm367_vm0, %v286_v1 }
  0x92   : > { %3863 = vmatmul.mubr.msk.f32.gmra.mrb[58].mxu0 %vm367_vm0, %v287_v2  ;;  %v339_v2 = vld [vmem:[%s4921_s19 + $0x378] sm:$0xff] }
  0x93   : > { %3865 = vmatprep.mubr.msk.f32.mxu0 %vm367_vm0, %v288_v3 }
  0x96   : > { %3866 = vmatmul.mubr.msk.f32.gmra.mrb[60].mxu0 %vm367_vm0, %v289_v4  ;;  %v340_v4 = vld [vmem:[%s4921_s19 + $0x380] sm:$0xff] }
  0x97   : > { %3868 = vmatprep.mubr.msk.f32.mxu0 %vm367_vm0, %v290_v5 }
  0x9a   : > { %3869 = vmatmul.mubr.msk.f32.gmra.mrb[62].mxu0 %vm367_vm0, %v291_v6 }
  0x9b   : > { %3871 = vmatprep.mubr.msk.f32.mxu0 %vm367_vm0, %v292_v7 }
  0x9e   : > { %3872 = vmatmul.mubr.msk.f32.gmra.mrb[64].mxu0 %vm367_vm0, %v293_v8 }
  0x9f   : > { %3874 = vmatprep.mubr.msk.f32.mxu0 %vm367_vm0, %v294_v9 }
  0xa2   : > { %3875 = vmatmul.mubr.msk.f32.gmra.mrb[66].mxu0 %vm367_vm0, %v295_v10  ;;  %v341_v10 = vld [vmem:[%s4921_s19 + $0x388] sm:$0xff] }
  0xa3   : > { %3877 = vmatprep.mubr.msk.f32.mxu0 %vm367_vm0, %v296_v11 }
  0xa6   : > { %3878 = vmatmul.mubr.msk.f32.gmra.mrb[68].mxu0 %vm367_vm0, %v297_v12  ;;  %v342_v12 = vld [vmem:[%s4921_s19 + $0x390] sm:$0xff] }
  0xa7   : > { %3880 = vmatprep.mubr.msk.f32.mxu0 %vm367_vm0, %v298_v13 }
  0xaa   : > { %3881 = vmatmul.mubr.msk.f32.gmra.mrb[70].mxu0 %vm367_vm0, %v299_v14 }
  0xab   : > { %3883 = vmatprep.mubr.msk.f32.mxu0 %vm367_vm0, %v300_v15 }
  0xae   : > { %3884 = vmatmul.mubr.msk.f32.gmra.mrb[72].mxu0 %vm367_vm0, %v301_v16 }
  0xaf   : > { %3886 = vmatprep.mubr.msk.f32.mxu0 %vm367_vm0, %v302_v17 }
  0xb2   : > { %3887 = vmatmul.mubr.msk.f32.gmra.mrb[74].mxu0 %vm367_vm0, %v303_v18  ;;  %v343_v18 = vld [vmem:[%s4921_s19 + $0x398] sm:$0xff] }
  0xb3   : > { %3889 = vmatprep.mubr.msk.f32.mxu0 %vm367_vm0, %v304_v19 }
  0xb6   : > { %3890 = vmatmul.mubr.msk.f32.gmra.mrb[76].mxu0 %vm367_vm0, %v305_v20 }
  0xb7   : > { %3892 = vmatprep.mubr.msk.f32.mxu0 %vm367_vm0, %v306_v21  ;;  %v344_v21 = vld [vmem:[%s4921_s19 + $0x3a0] sm:$0xff] }
  0xba   : > { %3893 = vmatmul.mubr.msk.f32.gmra.mrb[78].mxu0 %vm367_vm0, %v307_v22 }
  0xbb   : > { %3895 = vmatprep.mubr.msk.f32.mxu0 %vm367_vm0, %v308_v23 }
  0xbe   : > { %3896 = vmatmul.mubr.msk.f32.gmra.mrb[80].mxu0 %vm367_vm0, %v309_v24 }
  0xbf   : > { %3898 = vmatprep.mubr.msk.f32.mxu0 %vm367_vm0, %v310_v25 }
  0xc2   : > { %3899 = vmatmul.mubr.msk.f32.gmra.mrb[82].mxu0 %vm367_vm0, %v311_v26 }
  0xc3   : > { %3901 = vmatprep.mubr.msk.f32.mxu0 %vm367_vm0, %v312_v27 }
  0xc6   : > { %3902 = vmatmul.mubr.msk.f32.gmra.mrb[84].mxu0 %vm367_vm0, %v313_v28 }
  0xc7   : > { %3904 = vmatprep.mubr.msk.f32.mxu0 %vm367_vm0, %v314_v29 }
  0xca   : > { %3905 = vmatmul.mubr.msk.f32.gmra.mrb[86].mxu0 %vm367_vm0, %v315_v30  ;;  %v345_v30 = vld [vmem:[%s4921_s19 + $0x3a8] sm:$0xff] }
  0xcb   : > { %3907 = vmatprep.mubr.msk.f32.mxu0 %vm367_vm0, %v316_v31 }
  0xce   : > { %3908 = vmatmul.mubr.msk.f32.gmra.mrb[88].mxu0 %vm367_vm0, %v317_v32 }
  0xcf   : > { %3910 = vmatprep.mubr.msk.f32.mxu0 %vm367_vm0, %v318_v33  ;;  %v346_v33 = vld [vmem:[%s4921_s19 + $0x3b0] sm:$0xff] }
  0xd2   : > { %3911 = vmatmul.mubr.msk.f32.gmra.mrb[90].mxu0 %vm367_vm0, %v319_v34 }
  0xd3   : > { %3913 = vmatprep.mubr.msk.f32.mxu0 %vm367_vm0, %v320_v35 }
  0xd6   : > { %3914 = vmatmul.mubr.msk.f32.gmra.mrb[92].mxu0 %vm367_vm0, %v321_v36 }
  0xd7   : > { %3916 = vmatprep.mubr.msk.f32.mxu0 %vm367_vm0, %v322_v37 }
  0xda   : > { %3917 = vmatmul.mubr.msk.f32.gmra.mrb[94].mxu0 %vm367_vm0, %v323_v38 }
  0xdb   : > { %3919 = vmatprep.mubr.msk.f32.mxu0 %vm367_vm0, %v324_v39 }
  0xde   : > { %3920 = vmatmul.mubr.msk.f32.gmra.mrb[96].mxu0 %vm367_vm0, %v325_v40 }
  0xdf   : > { %3922 = vmatprep.mubr.msk.f32.mxu0 %vm367_vm0, %v326_v41 }
  0xe2   : > { %3923 = vmatmul.mubr.msk.f32.gmra.mrb[98].mxu0 %vm367_vm0, %v327_v42  ;;  %v347_v42 = vld [vmem:[%s4921_s19 + $0x3b8] sm:$0xff] }
  0xe3   : > { %3925 = vmatprep.mubr.msk.f32.mxu0 %vm367_vm0, %v328_v43 }
  0xe6   : > { %3926 = vmatmul.mubr.msk.f32.gmra.mrb[100].mxu0 %vm367_vm0, %v329_v44 }
  0xe7   : > { %3928 = vmatprep.mubr.msk.f32.mxu0 %vm367_vm0, %v330_v45  ;;  %v348_v45 = vld [vmem:[%s4921_s19 + $0x3c0] sm:$0xff] }
  0xea   : > { %3929 = vmatmul.mubr.msk.f32.gmra.mrb[102].mxu0 %vm367_vm0, %v331_v46 }
  0xeb   : > { %3931 = vmatprep.mubr.msk.f32.mxu0 %vm367_vm0, %v332_v47 }
  0xee   : > { %3932 = vmatmul.mubr.msk.f32.gmra.mrb[104].mxu0 %vm367_vm0, %v333_v48 }
  0xef   : > { %3934 = vmatprep.mubr.msk.f32.mxu0 %vm367_vm0, %v334_v49 }
  0xf1   : > { %v3777_v53 = vpop.f32.mrb[0].mxu0 }
  0xf2   : > { %v824_v54 = vadd.f32 %v3777_v53, %v5139_v50  ;;  %v818_v55 = vpop.f32.mrb[1].mxu0  ;;  %3935 = vmatmul.mubr.msk.f32.gmra.mrb[106].mxu0 %vm367_vm0, %v335_v51 }
  0xf3   : > { %v819_v57 = vadd.f32 %v5139_v50, %v818_v55  ;;  %3937 = vmatprep.mubr.msk.f32.mxu0 %vm367_vm0, %v336_v52  ;;  %v349_v55 = vld [vmem:[%s4921_s19 + $0x3c8] sm:$0xff] }
  0xf4   : > { %v3226_v59 = vmul.f32 -1.442695, %v824_v54 }
  0xf5   : > { %v3225_v61 = vmul.f32 -1.442695, %v819_v57  ;;  %v3780_v62 = vpop.f32.mrb[2].mxu0 }
  0xf6   : > { %4209 = vpow2.f32 %v3226_v59  ;;  %v834_v63 = vadd.f32 %v3780_v62, %v5139_v50  ;;  %v828_v0 = vpop.f32.mrb[3].mxu0  ;;  %3938 = vmatmul.mubr.msk.f32.gmra.mrb[108].mxu0 %vm367_vm0, %v337_v58  ;;  %v350_v58 = vld [vmem:[%s4921_s19 + $0x3d0] sm:$0xff] }
  0xf7   : > { %4211 = vpow2.f32 %v3225_v61  ;;  %v829_v1 = vadd.f32 %v5139_v50, %v828_v0  ;;  %3940 = vmatprep.mubr.msk.f32.mxu0 %vm367_vm0, %v338_v60 }
  0xf8   : > { %v3228_v3 = vmul.f32 -1.442695, %v834_v63 }
  0xf9   : > { %v3227_v5 = vmul.f32 -1.442695, %v829_v1  ;;  %v3783_v6 = vpop.f32.mrb[4].mxu0 }
  0xfa   : > { %4213 = vpow2.f32 %v3228_v3  ;;  %v844_v7 = vadd.f32 %v3783_v6, %v5139_v50  ;;  %v838_v8 = vpop.f32.mrb[5].mxu0  ;;  %3941 = vmatmul.mubr.msk.f32.gmra.mrb[110].mxu0 %vm367_vm0, %v339_v2 }
  0xfb   : > { %4215 = vpow2.f32 %v3227_v5  ;;  %v839_v9 = vadd.f32 %v5139_v50, %v838_v8  ;;  %3943 = vmatprep.mubr.msk.f32.mxu0 %vm367_vm0, %v340_v4  ;;  %v351_v4 = vld [vmem:[%s4921_s19 + $0x3d8] sm:$0xff] }
  0xfc   : > { %v3230_v11 = vmul.f32 -1.442695, %v844_v7 }
  0xfd   : > { %v3229_v13 = vmul.f32 -1.442695, %v839_v9  ;;  %v3786_v14 = vpop.f32.mrb[6].mxu0  ;;  %v352_v9 = vld [vmem:[%s4921_s19 + $0x3e0] sm:$0xff] }
  0xfe   : > { %4217 = vpow2.f32 %v3230_v11  ;;  %v854_v15 = vadd.f32 %v3786_v14, %v5139_v50  ;;  %v848_v16 = vpop.f32.mrb[7].mxu0  ;;  %3944 = vmatmul.mubr.msk.f32.gmra.mrb[112].mxu0 %vm367_vm0, %v341_v10 }
  0xff   : > { %4219 = vpow2.f32 %v3229_v13  ;;  %v849_v17 = vadd.f32 %v5139_v50, %v848_v16  ;;  %3946 = vmatprep.mubr.msk.f32.mxu0 %vm367_vm0, %v342_v12 }
 0x100   : > { %v4210_v19 = vpop.eup %4209  ;;  %v3232_v20 = vmul.f32 -1.442695, %v854_v15 }
 0x101   : > { %v4212_v22 = vpop.eup %4211  ;;  %v1842_v23 = vadd.f32 1.0, %v4210_v19  ;;  %v3231_v24 = vmul.f32 -1.442695, %v849_v17  ;;  %v3789_v25 = vpop.f32.mrb[8].mxu0  ;;  %v353_v19 = vld [vmem:[%s4921_s19 + $0x3e8] sm:$0xff] }
 0x102   : > { %v1841_v26 = vadd.f32 1.0, %v4212_v22  ;;  %4221 = vpow2.f32 %v3232_v20  ;;  %v864_v27 = vadd.f32 %v3789_v25, %v5139_v50  ;;  %v858_v28 = vpop.f32.mrb[9].mxu0  ;;  %3947 = vmatmul.mubr.msk.f32.gmra.mrb[114].mxu0 %vm367_vm0, %v343_v18 }
 0x103   : > { %4223 = vrcp.f32 %v1842_v23  ;;  %v859_v29 = vadd.f32 %v5139_v50, %v858_v28  ;;  %3949 = vmatprep.mubr.msk.f32.mxu0 %vm367_vm0, %v344_v21 }
 0x104   : > { %v4214_v31 = vpop.eup %4213  ;;  %4225 = vrcp.f32 %v1841_v26  ;;  %v3234_v32 = vmul.f32 -1.442695, %v864_v27 }
 0x105   : > { %v4216_v34 = vpop.eup %4215  ;;  %v1844_v35 = vadd.f32 1.0, %v4214_v31  ;;  %4227 = vpow2.f32 %v3231_v24  ;;  %v3233_v36 = vmul.f32 -1.442695, %v859_v29  ;;  %v3792_v37 = vpop.f32.mrb[10].mxu0  ;;  %v354_v24 = vld [vmem:[%s4921_s19 + $0x3f0] sm:$0xff] }
 0x106   : > { %v1843_v38 = vadd.f32 1.0, %v4216_v34  ;;  %4229 = vpow2.f32 %v3234_v32  ;;  %v874_v39 = vadd.f32 %v3792_v37, %v5139_v50  ;;  %v868_v40 = vpop.f32.mrb[11].mxu0  ;;  %3950 = vmatmul.mubr.msk.f32.gmra.mrb[116].mxu0 %vm367_vm0, %v345_v30  ;;  %v355_v34 = vld [vmem:[%s4921_s19 + $0x3f8] sm:$0xff] }
 0x107   : > { %4231 = vrcp.f32 %v1844_v35  ;;  %v869_v41 = vadd.f32 %v5139_v50, %v868_v40  ;;  %3952 = vmatprep.mubr.msk.f32.mxu0 %vm367_vm0, %v346_v33 }
 0x108   : > { %v4218_v43 = vpop.eup %4217  ;;  %4233 = vrcp.f32 %v1843_v38  ;;  %v3236_v44 = vmul.f32 -1.442695, %v874_v39 }
 0x109   : > { %v4220_v46 = vpop.eup %4219  ;;  %v1846_v47 = vadd.f32 1.0, %v4218_v43  ;;  %4235 = vpow2.f32 %v3233_v36  ;;  %v3235_v48 = vmul.f32 -1.442695, %v869_v41  ;;  %v3795_v49 = vpop.f32.mrb[12].mxu0 }
 0x10a   : > { %v1845_v51 = vadd.f32 1.0, %v4220_v46  ;;  %4237 = vpow2.f32 %v3236_v44  ;;  %v884_v52 = vadd.f32 %v3795_v49, %v5139_v50  ;;  %v878_v53 = vpop.f32.mrb[13].mxu0  ;;  %3953 = vmatmul.mubr.msk.f32.gmra.mrb[118].mxu0 %vm367_vm0, %v347_v42 }
 0x10b   : > { %4239 = vrcp.f32 %v1846_v47  ;;  %v879_v54 = vadd.f32 %v5139_v50, %v878_v53  ;;  %3955 = vmatprep.mubr.msk.f32.mxu0 %vm367_vm0, %v348_v45 }
 0x10c   : > { %v4222_v56 = vpop.eup %4221  ;;  %4241 = vrcp.f32 %v1845_v51  ;;  %v3238_v57 = vmul.f32 -1.442695, %v884_v52 }
 0x10d   : > { %v5190_v59 = vpop.eup %4223  ;;  %v1848_v60 = vadd.f32 1.0, %v4222_v56  ;;  %4243 = vpow2.f32 %v3235_v48  ;;  %v3237_v61 = vmul.f32 -1.442695, %v879_v54  ;;  %v3798_v62 = vpop.f32.mrb[14].mxu0 }
 0x10e   : > { %v5192_v63 = vpop.eup %4225  ;;  %4245 = vpow2.f32 %v3238_v57  ;;  %v894_v0 = vadd.f32 %v3798_v62, %v5139_v50  ;;  %v888_v1 = vpop.f32.mrb[15].mxu0  ;;  %3956 = vmatmul.mubr.msk.f32.gmra.mrb[120].mxu0 %vm367_vm0, %v349_v55 }
 0x10f   : > { %v4228_v2 = vpop.eup %4227  ;;  %4247 = vrcp.f32 %v1848_v60  ;;  %v889_v3 = vadd.f32 %v5139_v50, %v888_v1  ;;  %3958 = vmatprep.mubr.msk.f32.mxu0 %vm367_vm0, %v350_v58  ;;  %v3978_v5 = vpack.c.bf16 %v5190_v59, %v5192_v63 }
 0x110   : > { %v4230_v6 = vpop.eup %4229  ;;  %v1847_v7 = vadd.f32 1.0, %v4228_v2  ;;  %4249 = vpow2.f32 %v3237_v61  ;;  %v3240_v8 = vmul.f32 -1.442695, %v894_v0 }
 0x111   : > { %v5202_v10 = vpop.eup %4231  ;;  %v1850_v11 = vadd.f32 1.0, %v4230_v6  ;;  %v3239_v12 = vmul.f32 -1.442695, %v889_v3  ;;  %v3801_v13 = vpop.f32.mrb[16].mxu0 }
 0x112   : > { %v5204_v14 = vpop.eup %4233  ;;  %4251 = vrcp.f32 %v1847_v7  ;;  %v904_v15 = vadd.f32 %v3801_v13, %v5139_v50  ;;  %v898_v16 = vpop.f32.mrb[17].mxu0  ;;  %3959 = vmatmul.mubr.msk.f32.gmra.mrb[122].mxu0 %vm367_vm0, %v351_v4 }
 0x113   : > { %v4236_v17 = vpop.eup %4235  ;;  %4253 = vrcp.f32 %v1850_v11  ;;  %v899_v18 = vadd.f32 %v5139_v50, %v898_v16  ;;  %3961 = vmatprep.mubr.msk.f32.mxu0 %vm367_vm0, %v352_v9  ;;  %v3984_v20 = vpack.c.bf16 %v5202_v10, %v5204_v14 }
 0x114   : > { %v4238_v21 = vpop.eup %4237  ;;  %v1849_v22 = vadd.f32 1.0, %v4236_v17  ;;  %4255 = vpow2.f32 %v3240_v8  ;;  %v3242_v23 = vmul.f32 -1.442695, %v904_v15 }
 0x115   : > { %v5214_v25 = vpop.eup %4239  ;;  %v1852_v26 = vadd.f32 1.0, %v4238_v21  ;;  %4257 = vpow2.f32 %v3239_v12  ;;  %v3241_v27 = vmul.f32 -1.442695, %v899_v18  ;;  %v3804_v28 = vpop.f32.mrb[18].mxu0 }
 0x116   : > { %v5216_v29 = vpop.eup %4241  ;;  %4259 = vrcp.f32 %v1849_v22  ;;  %v914_v30 = vadd.f32 %v3804_v28, %v5139_v50  ;;  %v908_v31 = vpop.f32.mrb[19].mxu0  ;;  %3962 = vmatmul.mubr.msk.f32.gmra.mrb[124].mxu0 %vm367_vm0, %v353_v19 }
 0x117   : > { %v4244_v32 = vpop.eup %4243  ;;  %4261 = vrcp.f32 %v1852_v26  ;;  %v909_v33 = vadd.f32 %v5139_v50, %v908_v31  ;;  %3964 = vmatprep.mubr.msk.f32.mxu0 %vm367_vm0, %v354_v24  ;;  %v3990_v35 = vpack.c.bf16 %v5214_v25, %v5216_v29  ;;  %v4821_v29 = vmov 0  }
 0x118   : > { %v4246_v36 = vpop.eup %4245  ;;  %v1851_v37 = vadd.f32 1.0, %v4244_v32  ;;  %4263 = vpow2.f32 %v3242_v23  ;;  %v3244_v38 = vmul.f32 -1.442695, %v914_v30  ;;  %4208 = vset.pattern.permute.xlu0 %v4821_v29 }
 0x119   : > { %v5225_v39 = vpop.eup %4247  ;;  %v1854_v40 = vadd.f32 1.0, %v4246_v36  ;;  %4265 = vpow2.f32 %v3241_v27  ;;  %v3807_v41 = vpop.f32.mrb[20].mxu0  ;;  %v3243_v43 = vmul.f32 -1.442695, %v909_v33 }
 0x11a   : > { %v4250_v42 = vpop.eup %4249  ;;  %4267 = vrcp.f32 %v1851_v37  ;;  %v924_v44 = vadd.f32 %v3807_v41, %v5139_v50  ;;  %v918_v45 = vpop.f32.mrb[21].mxu0  ;;  %3965 = vmatmul.mubr.msk.f32.gmra.mrb[126].mxu0 %vm367_vm0, %v355_v34 }
 0x11b   : > { %4269 = vrcp.f32 %v1854_v40  ;;  %v1853_v46 = vadd.f32 1.0, %v4250_v42  ;;  %v919_v47 = vadd.f32 %v5139_v50, %v918_v45 }
 0x11c   : > { %v5230_v48 = vpop.eup %4251  ;;  %4271 = vpow2.f32 %v3244_v38  ;;  %v3246_v49 = vmul.f32 -1.442695, %v924_v44 }
 0x11d   : > { %v5232_v51 = vpop.eup %4253  ;;  %4273 = vrcp.f32 %v1853_v46  ;;  %v3245_v52 = vmul.f32 -1.442695, %v919_v47  ;;  %v3810_v53 = vpop.f32.mrb[22].mxu0  ;;  %v3996_v54 = vpack.c.bf16 %v5225_v39, %v5230_v48 }
 0x11e   : > { %v4256_v55 = vpop.eup %4255  ;;  %4275 = vpow2.f32 %v3243_v43  ;;  %v934_v56 = vadd.f32 %v3810_v53, %v5139_v50  ;;  %v928_v57 = vpop.f32.mrb[23].mxu0 }
 0x11f   : > { %v4258_v58 = vpop.eup %4257  ;;  %v1856_v60 = vadd.f32 1.0, %v4256_v55  ;;  %4277 = vpow2.f32 %v3246_v49  ;;  %v929_v61 = vadd.f32 %v5139_v50, %v928_v57 }
 0x120   : > { %v5238_v62 = vpop.eup %4259  ;;  %v1855_v0 = vadd.f32 1.0, %v4258_v58  ;;  %4279 = vpow2.f32 %v3245_v52  ;;  %v3248_v1 = vmul.f32 -1.442695, %v934_v56 }
 0x121   : > { %v5240_v2 = vpop.eup %4261  ;;  %4281 = vrcp.f32 %v1856_v60  ;;  %v3247_v3 = vmul.f32 -1.442695, %v929_v61  ;;  %v3813_v4 = vpop.f32.mrb[24].mxu0  ;;  %v4002_v6 = vpack.c.bf16 %v5232_v51, %v5238_v62 }
 0x122   : > { %v4264_v7 = vpop.eup %4263  ;;  %4283 = vrcp.f32 %v1855_v0  ;;  %v944_v8 = vadd.f32 %v3813_v4, %v5139_v50  ;;  %v938_v9 = vpop.f32.mrb[25].mxu0 }
 0x123   : > { %v4266_v11 = vpop.eup %4265  ;;  %v1858_v12 = vadd.f32 1.0, %v4264_v7  ;;  %4285 = vpow2.f32 %v3248_v1  ;;  %v939_v13 = vadd.f32 %v5139_v50, %v938_v9 }
 0x124   : > { %v5246_v15 = vpop.eup %4267  ;;  %v1857_v16 = vadd.f32 1.0, %v4266_v11  ;;  %4287 = vpow2.f32 %v3247_v3  ;;  %v3250_v17 = vmul.f32 -1.442695, %v944_v8 }
 0x125   : > { %v5248_v18 = vpop.eup %4269  ;;  %4289 = vrcp.f32 %v1858_v12  ;;  %v3249_v19 = vmul.f32 -1.442695, %v939_v13  ;;  %v3816_v21 = vpop.f32.mrb[26].mxu0  ;;  %v4008_v22 = vpack.c.bf16 %v5240_v2, %v5246_v15 }
 0x126   : > { %v4272_v23 = vpop.eup %4271  ;;  %4291 = vrcp.f32 %v1857_v16  ;;  %v954_v24 = vadd.f32 %v3816_v21, %v5139_v50  ;;  %v948_v26 = vpop.f32.mrb[27].mxu0 }
 0x127   : > { %v5253_v27 = vpop.eup %4273  ;;  %v1860_v28 = vadd.f32 1.0, %v4272_v23  ;;  %4293 = vpow2.f32 %v3250_v17  ;;  %v949_v30 = vadd.f32 %v5139_v50, %v948_v26 }
 0x128   : > { %v4276_v31 = vpop.eup %4275  ;;  %4295 = vpow2.f32 %v3249_v19  ;;  %v3252_v32 = vmul.f32 -1.442695, %v954_v24  ;;  %v4014_v33 = vpack.c.bf16 %v5248_v18, %v5253_v27  ;;  %v5423_v18 = vld [vmem:[%s5915_s2] ss:$0 sm:$0xff] }
 0x129   : > { %v4278_v34 = vpop.eup %4277  ;;  %4297 = vrcp.f32 %v1860_v28  ;;  %v1859_v36 = vadd.f32 1.0, %v4276_v31  ;;  %v3819_v37 = vpop.f32.mrb[28].mxu0  ;;  %v3251_v41 = vmul.f32 -1.442695, %v949_v30 }
 0x12a   : > { %v4280_v38 = vpop.eup %4279  ;;  %v1862_v40 = vadd.f32 1.0, %v4278_v34  ;;  %4299 = vpow2.f32 %v3252_v32  ;;  %v964_v42 = vadd.f32 %v3819_v37, %v5139_v50  ;;  %v958_v43 = vpop.f32.mrb[29].mxu0 }
 0x12b   : > { %v5259_v44 = vpop.eup %4281  ;;  %4301 = vrcp.f32 %v1859_v36  ;;  %v1861_v45 = vadd.f32 1.0, %v4280_v38  ;;  %v959_v46 = vadd.f32 %v5139_v50, %v958_v43 }
 0x12c   : > { %v5262_v47 = vpop.eup %4283  ;;  %4303 = vrcp.f32 %v1862_v40  ;;  %v3254_v49 = vmul.f32 -1.442695, %v964_v42 }
 0x12d   : > { %v4286_v52 = vpop.eup %4285  ;;  %4305 = vrcp.f32 %v1861_v45  ;;  %v3822_v53 = vpop.f32.mrb[30].mxu0  ;;  %v4020_v55 = vpack.c.bf16 %v5259_v44, %v5262_v47  ;;  %v3253_v58 = vmul.f32 -1.442695, %v959_v46 }
 0x12e   : > { %v4288_v56 = vpop.eup %4287  ;;  %v1864_v57 = vadd.f32 1.0, %v4286_v52  ;;  %4307 = vpow2.f32 %v3251_v41  ;;  %v974_v60 = vadd.f32 %v3822_v53, %v5139_v50  ;;  %v968_v61 = vpop.f32.mrb[31].mxu0 }
 0x12f   : > { %v4290_v0 = vpop.eup %4289  ;;  %v1863_v1 = vadd.f32 1.0, %v4288_v56  ;;  %4309 = vpow2.f32 %v3254_v49  ;;  %v969_v3 = vadd.f32 %v5139_v50, %v968_v61 }
 0x130   : > { %v4292_v4 = vpop.eup %4291  ;;  %4311 = vrcp.f32 %v1864_v57  ;;  %v3256_v7 = vmul.f32 -1.442695, %v974_v60 }
 0x131   : > { %v4294_v9 = vpop.eup %4293  ;;  %4313 = vrcp.f32 %v1863_v1  ;;  %v3825_v11 = vpop.f32.mrb[32].mxu0  ;;  %v3975_v12 = vpack.c.bf16 %v4290_v0, %v4292_v4  ;;  %v3255_v17 = vmul.f32 -1.442695, %v969_v3 }
 0x132   : > { %v4296_v13 = vpop.eup %4295  ;;  %v1866_v16 = vadd.f32 1.0, %v4294_v9  ;;  %4315 = vpow2.f32 %v3253_v58  ;;  %v984_v19 = vadd.f32 %v3825_v11, %v5139_v50  ;;  %v978_v21 = vpop.f32.mrb[33].mxu0 }
 0x133   : > { %v4298_v23 = vpop.eup %4297  ;;  %v1865_v24 = vadd.f32 1.0, %v4296_v13  ;;  %4317 = vpow2.f32 %v3256_v7  ;;  %3977 = vmatprep.subr.msk.bf16.mxu1 %vm5270_vm2, %v3975_v12  ;;  %v979_v26 = vadd.f32 %v5139_v50, %v978_v21 }
 0x134   : > { %v4300_v28 = vpop.eup %4299  ;;  %4319 = vrcp.f32 %v1866_v16  ;;  %v3258_v30 = vmul.f32 -1.442695, %v984_v19  ;;  %3980 = vmatpush3.bf16.xpose.msk.msra.mxu1 %vm5270_vm2, %v3978_v5 }
 0x135   : > { %v4302_v31 = vpop.eup %4301  ;;  %4321 = vrcp.f32 %v1865_v24  ;;  %v1868_v32 = vadd.f32 1.0, %v4300_v28  ;;  %v3257_v34 = vmul.f32 -1.442695, %v979_v26  ;;  %v3828_v36 = vpop.f32.mrb[34].mxu0 }
 0x136   : > { %v4304_v37 = vpop.eup %4303  ;;  %4323 = vpow2.f32 %v3255_v17  ;;  %v994_v38 = vadd.f32 %v3828_v36, %v5139_v50  ;;  %v3981_v40 = vpack.c.bf16 %v4298_v23, %v4302_v31  ;;  %v988_v41 = vpop.f32.mrb[35].mxu0 }
 0x137   : > { %v4306_v42 = vpop.eup %4305  ;;  %4325 = vrcp.f32 %v1868_v32  ;;  %v989_v43 = vadd.f32 %v5139_v50, %v988_v41 }
 0x138   : > { %v4308_v45 = vpop.eup %4307  ;;  %4327 = vpow2.f32 %v3258_v30  ;;  %v3260_v59 = vmul.f32 -1.442695, %v994_v38  ;;  %3983 = vmatprep.subr.msk.bf16.mxu1 %vm5270_vm2, %v3981_v40  ;;  %v3987_v63 = vpack.c.bf16 %v4304_v37, %v4306_v42 }
 0x139   : > { %v4310_v5 = vpop.eup %4309  ;;  %v1867_v46 = vadd.f32 1.0, %v4308_v45  ;;  %4329 = vpow2.f32 %v3257_v34  ;;  %v3259_v49 = vmul.f32 -1.442695, %v989_v43  ;;  %v3831_v52 = vpop.f32.mrb[36].mxu0 }
 0x13a   : > { %v4312_v53 = vpop.eup %4311  ;;  %v1870_v56 = vadd.f32 1.0, %v4310_v5  ;;  %4331 = vpow2.f32 %v3260_v59  ;;  %v1004_v57 = vadd.f32 %v3831_v52, %v5139_v50  ;;  %v998_v58 = vpop.f32.mrb[37].mxu0 }
 0x13b   : > { %v4314_v60 = vpop.eup %4313  ;;  %4333 = vrcp.f32 %v1867_v46  ;;  %v999_v61 = vadd.f32 %v5139_v50, %v998_v58 }
 0x13c   : > { %v4316_v0 = vpop.eup %4315  ;;  %4335 = vrcp.f32 %v1870_v56  ;;  %v3262_v1 = vmul.f32 -1.442695, %v1004_v57  ;;  %3986 = vmatpush3.bf16.xpose.msk.msra.mxu1 %vm5270_vm2, %v3984_v20  ;;  %v3993_v3 = vpack.c.bf16 %v4312_v53, %v4314_v60 }
 0x13d   : > { %v4318_v4 = vpop.eup %4317  ;;  %v1869_v7 = vadd.f32 1.0, %v4316_v0  ;;  %4337 = vpow2.f32 %v3259_v49  ;;  %v3261_v9 = vmul.f32 -1.442695, %v999_v61  ;;  %3989 = vmatprep.subr.msk.bf16.mxu1 %vm5270_vm2, %v3987_v63  ;;  %v3834_v11 = vpop.f32.mrb[38].mxu0 }
 0x13e   : > { %v5296_v12 = vpop.eup %4319  ;;  %v1872_v13 = vadd.f32 1.0, %v4318_v4  ;;  %4339 = vpow2.f32 %v3262_v1  ;;  %v1014_v16 = vadd.f32 %v3834_v11, %v5139_v50  ;;  %v1008_v17 = vpop.f32.mrb[39].mxu0 }
 0x13f   : > { %v5299_v10 = vpop.eup %4321  ;;  %4341 = vrcp.f32 %v1869_v7  ;;  %v1009_v14 = vadd.f32 %v5139_v50, %v1008_v17 }
 0x140   : > { %v4324_v20 = vpop.eup %4323  ;;  %4343 = vrcp.f32 %v1872_v13  ;;  %v3264_v19 = vmul.f32 -1.442695, %v1014_v16  ;;  %v3999_v21 = vpack.c.bf16 %v5296_v12, %v5299_v10 }
 0x141   : > { %v5304_v23 = vpop.eup %4325  ;;  %v1871_v24 = vadd.f32 1.0, %v4324_v20  ;;  %4345 = vpow2.f32 %v3261_v9  ;;  %v3263_v26 = vmul.f32 -1.442695, %v1009_v14  ;;  %v3837_v28 = vpop.f32.mrb[40].mxu0 }
 0x142   : > { %v4328_v30 = vpop.eup %4327  ;;  %4347 = vpow2.f32 %v3264_v19  ;;  %v1024_v31 = vadd.f32 %v3837_v28, %v5139_v50  ;;  %v1018_v32 = vpop.f32.mrb[41].mxu0 }
 0x143   : > { %v4330_v34 = vpop.eup %4329  ;;  %4349 = vrcp.f32 %v1871_v24  ;;  %v1874_v36 = vadd.f32 1.0, %v4328_v30  ;;  %v1019_v37 = vadd.f32 %v5139_v50, %v1018_v32 }
 0x144   : > { %v4332_v38 = vpop.eup %4331  ;;  %v1873_v40 = vadd.f32 1.0, %v4330_v34  ;;  %4351 = vpow2.f32 %v3263_v26  ;;  %v3266_v41 = vmul.f32 -1.442695, %v1024_v31  ;;  %3992 = vmatpush3.bf16.xpose.msk.msra.mxu1 %vm5270_vm2, %v3990_v35  ;;  %v2226_v35 = vld [vmem:[#allocation2] sm:$0x1] }
 0x145   : > { %v5313_v42 = vpop.eup %4333  ;;  %4353 = vrcp.f32 %v1874_v36  ;;  %v1876_v43 = vadd.f32 1.0, %v4332_v38  ;;  %v3265_v45 = vmul.f32 -1.442695, %v1019_v37  ;;  %3995 = vmatprep.subr.msk.bf16.mxu1 %vm5270_vm2, %v3993_v3  ;;  %v3840_v59 = vpop.f32.mrb[42].mxu0  ;;  %2229 = vperm.xlu0 %4208, %v2226_v35  }
 0x146   : > { %v5317_v63 = vpop.eup %4335  ;;  %4355 = vrcp.f32 %v1873_v40  ;;  %v1034_v5 = vadd.f32 %v3840_v59, %v5139_v50  ;;  %v1028_v46 = vpop.f32.mrb[43].mxu0  ;;  %v4005_v25 = vpack.c.bf16 %v5304_v23, %v5313_v42 }
 0x147   : > { %v4338_v49 = vpop.eup %4337  ;;  %4357 = vrcp.f32 %v1876_v43  ;;  %v1029_v52 = vadd.f32 %v5139_v50, %v1028_v46 }
 0x148   : > { %v4340_v53 = vpop.eup %4339  ;;  %v1875_v56 = vadd.f32 1.0, %v4338_v49  ;;  %4359 = vpow2.f32 %v3266_v41  ;;  %v3268_v57 = vmul.f32 -1.442695, %v1034_v5 }
 0x149   : > { %v5323_v58 = vpop.eup %4341  ;;  %v1878_v60 = vadd.f32 1.0, %v4340_v53  ;;  %4361 = vpow2.f32 %v3265_v45  ;;  %v3267_v61 = vmul.f32 -1.442695, %v1029_v52  ;;  %v3843_v0 = vpop.f32.mrb[44].mxu0 }
 0x14a   : > { %v5325_v1 = vpop.eup %4343  ;;  %4363 = vrcp.f32 %v1875_v56  ;;  %v1044_v3 = vadd.f32 %v3843_v0, %v5139_v50  ;;  %v1038_v4 = vpop.f32.mrb[45].mxu0  ;;  %v4011_v7 = vpack.c.bf16 %v5317_v63, %v5323_v58 }
 0x14b   : > { %v4346_v9 = vpop.eup %4345  ;;  %4365 = vrcp.f32 %v1878_v60  ;;  %v1039_v11 = vadd.f32 %v5139_v50, %v1038_v4 }
 0x14c   : > { %v4348_v12 = vpop.eup %4347  ;;  %v1877_v13 = vadd.f32 1.0, %v4346_v9  ;;  %4367 = vpow2.f32 %v3268_v57  ;;  %v3270_v16 = vmul.f32 -1.442695, %v1044_v3  ;;  %3998 = vmatpush3.bf16.xpose.msk.msra.mxu1 %vm5270_vm2, %v3996_v54 }
 0x14d   : > { %v5336_v17 = vpop.eup %4349  ;;  %v1880_v10 = vadd.f32 1.0, %v4348_v12  ;;  %4369 = vpow2.f32 %v3267_v61  ;;  %4001 = vmatprep.subr.msk.bf16.mxu1 %vm5270_vm2, %v3999_v21  ;;  %v3846_v14 = vpop.f32.mrb[46].mxu0  ;;  %v3269_v19 = vmul.f32 -1.442695, %v1039_v11 }
 0x14e   : > { %v4352_v20 = vpop.eup %4351  ;;  %4371 = vrcp.f32 %v1877_v13  ;;  %v1054_v24 = vadd.f32 %v3846_v14, %v5139_v50  ;;  %v1048_v26 = vpop.f32.mrb[47].mxu0  ;;  %v4017_v39 = vpack.c.bf16 %v5325_v1, %v5336_v17 }
 0x14f   : > { %v5343_v48 = vpop.eup %4353  ;;  %4373 = vrcp.f32 %v1880_v10  ;;  %v1879_v54 = vadd.f32 1.0, %v4352_v20  ;;  %v1049_v28 = vadd.f32 %v5139_v50, %v1048_v26 }
 0x150   : > { %v5346_v30 = vpop.eup %4355  ;;  %4375 = vpow2.f32 %v3270_v16  ;;  %v3272_v21 = vmul.f32 -1.442695, %v1054_v24 }
 0x151   : > { %v5348_v31 = vpop.eup %4357  ;;  %4377 = vrcp.f32 %v1879_v54  ;;  %v3271_v32 = vmul.f32 -1.442695, %v1049_v28  ;;  %v3849_v34 = vpop.f32.mrb[48].mxu0  ;;  %v4026_v36 = vpack.c.bf16 %v5343_v48, %v5346_v30 }
 0x152   : > { %v4360_v37 = vpop.eup %4359  ;;  %4379 = vpow2.f32 %v3269_v19  ;;  %v1064_v38 = vadd.f32 %v3849_v34, %v5139_v50  ;;  %v1058_v40 = vpop.f32.mrb[49].mxu0 }
 0x153   : > { %v4362_v41 = vpop.eup %4361  ;;  %v1882_v43 = vadd.f32 1.0, %v4360_v37  ;;  %4381 = vpow2.f32 %v3272_v21  ;;  %v1059_v45 = vadd.f32 %v5139_v50, %v1058_v40 }
 0x154   : > { %v5354_v59 = vpop.eup %4363  ;;  %v1881_v5 = vadd.f32 1.0, %v4362_v41  ;;  %4383 = vpow2.f32 %v3271_v32  ;;  %v3274_v46 = vmul.f32 -1.442695, %v1064_v38  ;;  %4004 = vmatpush3.bf16.xpose.msk.msra.mxu1 %vm5270_vm2, %v4002_v6 }
 0x155   : > { %v5361_v29 = vpop.eup %4365  ;;  %4385 = vrcp.f32 %v1882_v43  ;;  %v3273_v35 = vmul.f32 -1.442695, %v1059_v45  ;;  %4007 = vmatprep.subr.msk.bf16.mxu1 %vm5270_vm2, %v4005_v25  ;;  %v3852_v49 = vpop.f32.mrb[50].mxu0  ;;  %v4032_v52 = vpack.c.bf16 %v5348_v31, %v5354_v59 }
 0x156   : > { %v4368_v53 = vpop.eup %4367  ;;  %4387 = vrcp.f32 %v1881_v5  ;;  %v1074_v51 = vadd.f32 %v3852_v49, %v5139_v50  ;;  %v1068_v62 = vpop.f32.mrb[51].mxu0 }
 0x157   : > { %v4370_v6 = vpop.eup %4369  ;;  %v1884_v56 = vadd.f32 1.0, %v4368_v53  ;;  %4389 = vpow2.f32 %v3274_v46  ;;  %v1069_v57 = vadd.f32 %v5139_v50, %v1068_v62 }
 0x158   : > { %v5372_v60 = vpop.eup %4371  ;;  %v1883_v23 = vadd.f32 1.0, %v4370_v6  ;;  %4391 = vpow2.f32 %v3273_v35  ;;  %v3276_v42 = vmul.f32 -1.442695, %v1074_v51 }
 0x159   : > { %v5374_v25 = vpop.eup %4373  ;;  %4393 = vrcp.f32 %v1884_v56  ;;  %v3275_v61 = vmul.f32 -1.442695, %v1069_v57  ;;  %v3855_v0 = vpop.f32.mrb[52].mxu0  ;;  %v4038_v3 = vpack.c.bf16 %v5361_v29, %v5372_v60 }
 0x15a   : > { %v4376_v4 = vpop.eup %4375  ;;  %4395 = vrcp.f32 %v1883_v23  ;;  %v1084_v9 = vadd.f32 %v3855_v0, %v5139_v50  ;;  %v1078_v11 = vpop.f32.mrb[53].mxu0 }
 0x15b   : > { %v5379_v12 = vpop.eup %4377  ;;  %v1886_v13 = vadd.f32 1.0, %v4376_v4  ;;  %4397 = vpow2.f32 %v3276_v42  ;;  %v1079_v16 = vadd.f32 %v5139_v50, %v1078_v11 }
 0x15c   : > { %v4380_v10 = vpop.eup %4379  ;;  %4399 = vpow2.f32 %v3275_v61  ;;  %v3278_v14 = vmul.f32 -1.442695, %v1084_v9  ;;  %4010 = vmatpush3.bf16.xpose.msk.msra.mxu1 %vm5270_vm2, %v4008_v22  ;;  %v4044_v20 = vpack.c.bf16 %v5374_v25, %v5379_v12 }
 0x15d   : > { %v4382_v19 = vpop.eup %4381  ;;  %4401 = vrcp.f32 %v1886_v13  ;;  %v1885_v24 = vadd.f32 1.0, %v4380_v10  ;;  %4013 = vmatprep.subr.msk.bf16.mxu1 %vm5270_vm2, %v4011_v7  ;;  %v3858_v26 = vpop.f32.mrb[54].mxu0  ;;  %v3277_v2 = vmul.f32 -1.442695, %v1079_v16 }
 0x15e   : > { %v4384_v54 = vpop.eup %4383  ;;  %v1888_v28 = vadd.f32 1.0, %v4382_v19  ;;  %4403 = vpow2.f32 %v3278_v14  ;;  %v1094_v15 = vadd.f32 %v3858_v26, %v5139_v50  ;;  %v1088_v22 = vpop.f32.mrb[55].mxu0 }
 0x15f   : > { %v5395_v21 = vpop.eup %4385  ;;  %4405 = vrcp.f32 %v1885_v24  ;;  %v1887_v32 = vadd.f32 1.0, %v4384_v54  ;;  %v1089_v34 = vadd.f32 %v5139_v50, %v1088_v22 }
 0x160   : > { %v5398_v37 = vpop.eup %4387  ;;  %4407 = vrcp.f32 %v1888_v28  ;;  %v3280_v63 = vmul.f32 -1.442695, %v1094_v15 }
 0x161   : > { %v4390_v58 = vpop.eup %4389  ;;  %4409 = vrcp.f32 %v1887_v32  ;;  %v3861_v7 = vpop.f32.mrb[56].mxu0  ;;  %v4050_v38 = vpack.c.bf16 %v5395_v21, %v5398_v37  ;;  %v3279_v43 = vmul.f32 -1.442695, %v1089_v34 }
 0x162   : > { %v4392_v40 = vpop.eup %4391  ;;  %v1890_v41 = vadd.f32 1.0, %v4390_v58  ;;  %4411 = vpow2.f32 %v3277_v2  ;;  %v1104_v45 = vadd.f32 %v3861_v7, %v5139_v50  ;;  %v1098_v5 = vpop.f32.mrb[57].mxu0 }
 0x163   : > { %v5403_v46 = vpop.eup %4393  ;;  %v1889_v35 = vadd.f32 1.0, %v4392_v40  ;;  %4413 = vpow2.f32 %v3280_v63  ;;  %v1099_v49 = vadd.f32 %v5139_v50, %v1098_v5 }
 0x164   : > { %v5406_v53 = vpop.eup %4395  ;;  %4415 = vrcp.f32 %v1890_v41  ;;  %v3282_v51 = vmul.f32 -1.442695, %v1104_v45  ;;  %4016 = vmatpush3.bf16.xpose.msk.msra.mxu1 %vm5270_vm2, %v4014_v33 }
 0x165   : > { %v4398_v62 = vpop.eup %4397  ;;  %4417 = vrcp.f32 %v1889_v35  ;;  %4019 = vmatprep.subr.msk.bf16.mxu1 %vm5270_vm2, %v4017_v39  ;;  %v3864_v6 = vpop.f32.mrb[58].mxu0  ;;  %v4056_v50 = vpack.c.bf16 %v5403_v46, %v5406_v53  ;;  %v3281_v23 = vmul.f32 -1.442695, %v1099_v49 }
 0x166   : > { %v4400_v56 = vpop.eup %4399  ;;  %v1892_v57 = vadd.f32 1.0, %v4398_v62  ;;  %4419 = vpow2.f32 %v3279_v43  ;;  %v1114_v27 = vadd.f32 %v5423_v18, %v3864_v6  ;;  %v1108_v33 = vpop.f32.mrb[59].mxu0 }
 0x167   : > { %v5426_v1 = vpop.eup %4401  ;;  %v1891_v17 = vadd.f32 1.0, %v4400_v56  ;;  %4421 = vpow2.f32 %v3282_v51  ;;  %v1109_v39 = vadd.f32 %v5423_v18, %v1108_v33 }
 0x168   : > { %v4404_v42 = vpop.eup %4403  ;;  %4423 = vrcp.f32 %v1892_v57  ;;  %v3284_v61 = vmul.f32 -1.442695, %v1114_v27  ;;  %v5454_v57 = vld [vmem:[%s5916_s3] sm:$0x1] }
 0x169   : > { %v5429_v0 = vpop.eup %4405  ;;  %4425 = vrcp.f32 %v1891_v17  ;;  %v1894_v4 = vadd.f32 1.0, %v4404_v42  ;;  %v3283_v9 = vmul.f32 -1.442695, %v1109_v39  ;;  %v3867_v11 = vpop.f32.mrb[60].mxu0 }
 0x16a   : > { %v5431_v13 = vpop.eup %4407  ;;  %4427 = vpow2.f32 %v3281_v23  ;;  %v1124_v16 = vadd.f32 %v5423_v18, %v3867_v11  ;;  %v1118_v10 = vpop.f32.mrb[61].mxu0  ;;  %v4062_v14 = vpack.c.bf16 %v5426_v1, %v5429_v0 }
 0x16b   : > { %v5436_v19 = vpop.eup %4409  ;;  %4429 = vrcp.f32 %v1894_v4  ;;  %v1119_v24 = vadd.f32 %v5423_v18, %v1118_v10 }
 0x16c   : > { %v4412_v26 = vpop.eup %4411  ;;  %4431 = vpow2.f32 %v3284_v61  ;;  %v3286_v54 = vmul.f32 -1.442695, %v1124_v16  ;;  %4022 = vmatpush3.bf16.xpose.msk.msra.mxu1 %vm5270_vm2, %v4020_v55  ;;  %v4068_v28 = vpack.c.bf16 %v5431_v13, %v5436_v19 }
 0x16d   : > { %v4414_v2 = vpop.eup %4413  ;;  %v1893_v15 = vadd.f32 1.0, %v4412_v26  ;;  %4433 = vpow2.f32 %v3283_v9  ;;  %v3285_v22 = vmul.f32 -1.442695, %v1119_v24  ;;  %v3870_v32 = vpop.f32.mrb[62].mxu0 }
 0x16e   : > { %v4416_v34 = vpop.eup %4415  ;;  %v1896_v63 = vadd.f32 1.0, %v4414_v2  ;;  %4435 = vpow2.f32 %v3286_v54  ;;  %v1134_v58 = vadd.f32 %v5423_v18, %v3870_v32  ;;  %v1128_v7 = vpop.f32.mrb[63].mxu0 }
 0x16f   : > { %v4418_v40 = vpop.eup %4417  ;;  %4437 = vrcp.f32 %v1893_v15  ;;  %v1129_v44 = vadd.f32 %v5423_v18, %v1128_v7 }
 0x170   : > { %v4420_v47 = vpop.eup %4419  ;;  %4439 = vrcp.f32 %v1896_v63  ;;  %v3288_v55 = vmul.f32 -1.442695, %v1134_v58  ;;  %v4023_v41 = vpack.c.bf16 %v4416_v34, %v4418_v40 }
 0x171   : > { %v4422_v43 = vpop.eup %4421  ;;  %v1895_v45 = vadd.f32 1.0, %v4420_v47  ;;  %4441 = vpow2.f32 %v3285_v22  ;;  %v3287_v5 = vmul.f32 -1.442695, %v1129_v44  ;;  %v3873_v35 = vpop.f32.mrb[64].mxu0 }
 0x172   : > { %v4424_v49 = vpop.eup %4423  ;;  %v1898_v51 = vadd.f32 1.0, %v4422_v43  ;;  %4443 = vpow2.f32 %v3288_v55  ;;  %v1144_v62 = vadd.f32 %v5423_v18, %v3873_v35  ;;  %4025 = vmatprep.subr.msk.bf16.mxu1 %vm5270_vm2, %v4023_v41  ;;  %v1138_v6 = vpop.f32.mrb[65].mxu0 }
 0x173   : > { %v4426_v56 = vpop.eup %4425  ;;  %4445 = vrcp.f32 %v1895_v45  ;;  %3664 = vmatmul.mubr.msk.f32.vlgmr.msra.gmra.mrb[0].mxu1 %vm2236_vm1, %v5454_v57  ;;  %v1139_v23 = vadd.f32 %v5423_v18, %v1138_v6 }
 0x174   : > { %v4428_v27 = vpop.eup %4427  ;;  %4447 = vrcp.f32 %v1898_v51  ;;  %v3290_v33 = vmul.f32 -1.442695, %v1144_v62  ;;  %4028 = vmatpush3.bf16.xpose.msk.msra.mxu1 %vm5270_vm2, %v4026_v36  ;;  %v4029_v17 = vpack.c.bf16 %v4424_v49, %v4426_v56  ;;  %3697 = vmatprep.mubr.msk.f32.mxu1 %vm2236_vm1, %v5454_v57 }
 0x175   : > { %v4430_v39 = vpop.eup %4429  ;;  %v1897_v42 = vadd.f32 1.0, %v4428_v27  ;;  %4449 = vpow2.f32 %v3287_v5  ;;  %v3289_v61 = vmul.f32 -1.442695, %v1139_v23  ;;  %v3876_v4 = vpop.f32.mrb[66].mxu0 }
 0x176   : > { %v4432_v9 = vpop.eup %4431  ;;  %4451 = vpow2.f32 %v3290_v33  ;;  %v1154_v11 = vadd.f32 %v5423_v18, %v3876_v4  ;;  %4031 = vmatprep.subr.msk.bf16.mxu1 %vm5270_vm2, %v4029_v17  ;;  %v1148_v48 = vpop.f32.mrb[67].mxu0 }
 0x177   : > { %v4434_v30 = vpop.eup %4433  ;;  %4453 = vrcp.f32 %v1897_v42  ;;  %v1900_v36 = vadd.f32 1.0, %v4432_v9  ;;  %v1149_v16 = vadd.f32 %v5423_v18, %v1148_v48 }
 0x178   : > { %v4436_v10 = vpop.eup %4435  ;;  %v1899_v24 = vadd.f32 1.0, %v4434_v30  ;;  %4455 = vpow2.f32 %v3289_v61  ;;  %v3292_v26 = vmul.f32 -1.442695, %v1154_v11 }
 0x179   : > { %v4438_v54 = vpop.eup %4437  ;;  %4457 = vrcp.f32 %v1900_v36  ;;  %v1902_v2 = vadd.f32 1.0, %v4436_v10  ;;  %v3291_v15 = vmul.f32 -1.442695, %v1149_v16  ;;  %v3879_v22 = vpop.f32.mrb[68].mxu0 }
 0x17a   : > { %v4440_v32 = vpop.eup %4439  ;;  %4459 = vrcp.f32 %v1899_v24  ;;  %v1164_v34 = vadd.f32 %v5423_v18, %v3879_v22  ;;  %v1158_v63 = vpop.f32.mrb[69].mxu0  ;;  %v4035_v58 = vpack.c.bf16 %v4430_v39, %v4438_v54 }
 0x17b   : > { %v4442_v7 = vpop.eup %4441  ;;  %4461 = vrcp.f32 %v1902_v2  ;;  %v1159_v40 = vadd.f32 %v5423_v18, %v1158_v63 }
 0x17c   : > { %v4444_v44 = vpop.eup %4443  ;;  %v1901_v47 = vadd.f32 1.0, %v4442_v7  ;;  %4463 = vpow2.f32 %v3292_v26  ;;  %v3294_v55 = vmul.f32 -1.442695, %v1164_v34  ;;  %4034 = vmatpush3.bf16.xpose.msk.msra.mxu1 %vm5270_vm2, %v4032_v52 }
 0x17d   : > { %v4446_v41 = vpop.eup %4445  ;;  %v1904_v43 = vadd.f32 1.0, %v4444_v44  ;;  %4465 = vpow2.f32 %v3291_v15  ;;  %v3293_v45 = vmul.f32 -1.442695, %v1159_v40  ;;  %4037 = vmatprep.subr.msk.bf16.mxu1 %vm5270_vm2, %v4035_v58  ;;  %v3882_v5 = vpop.f32.mrb[70].mxu0 }
 0x17e   : > { %v5479_v35 = vpop.eup %4447  ;;  %4467 = vrcp.f32 %v1901_v47  ;;  %v1174_v49 = vadd.f32 %v5423_v18, %v3882_v5  ;;  %v1168_v51 = vpop.f32.mrb[71].mxu0  ;;  %v4041_v62 = vpack.c.bf16 %v4440_v32, %v4446_v41 }
 0x17f   : > { %v4450_v6 = vpop.eup %4449  ;;  %4469 = vrcp.f32 %v1904_v43  ;;  %v1169_v31 = vadd.f32 %v5423_v18, %v1168_v51 }
 0x180   : > { %v4452_v59 = vpop.eup %4451  ;;  %v1903_v52 = vadd.f32 1.0, %v4450_v6  ;;  %4471 = vpow2.f32 %v3294_v55  ;;  %v3296_v56 = vmul.f32 -1.442695, %v1174_v49 }
 0x181   : > { %v4454_v23 = vpop.eup %4453  ;;  %v1906_v27 = vadd.f32 1.0, %v4452_v59  ;;  %4473 = vpow2.f32 %v3293_v45  ;;  %v3885_v33 = vpop.f32.mrb[72].mxu0  ;;  %v3295_v39 = vmul.f32 -1.442695, %v1169_v31 }
 0x182   : > { %v4456_v17 = vpop.eup %4455  ;;  %4475 = vrcp.f32 %v1903_v52  ;;  %v1184_v42 = vadd.f32 %v5423_v18, %v3885_v33  ;;  %v1178_v61 = vpop.f32.mrb[73].mxu0  ;;  %v4047_v4 = vpack.c.bf16 %v5479_v35, %v4454_v23 }
 0x183   : > { %v5485_v9 = vpop.eup %4457  ;;  %4477 = vrcp.f32 %v1906_v27  ;;  %v1905_v11 = vadd.f32 1.0, %v4456_v17  ;;  %v1179_v48 = vadd.f32 %v5423_v18, %v1178_v61 }
 0x184   : > { %v5488_v30 = vpop.eup %4459  ;;  %4479 = vpow2.f32 %v3296_v56  ;;  %v3298_v36 = vmul.f32 -1.442695, %v1184_v42  ;;  %4040 = vmatpush3.bf16.xpose.msk.msra.mxu1 %vm5270_vm2, %v4038_v3 }
 0x185   : > { %v5495_v16 = vpop.eup %4461  ;;  %4481 = vrcp.f32 %v1905_v11  ;;  %v3297_v10 = vmul.f32 -1.442695, %v1179_v48  ;;  %4043 = vmatprep.subr.msk.bf16.mxu1 %vm5270_vm2, %v4041_v62  ;;  %v3888_v24 = vpop.f32.mrb[74].mxu0  ;;  %v4053_v26 = vpack.c.bf16 %v5485_v9, %v5488_v30 }
 0x186   : > { %v4464_v54 = vpop.eup %4463  ;;  %4483 = vpow2.f32 %v3295_v39  ;;  %v1194_v2 = vadd.f32 %v5423_v18, %v3888_v24  ;;  %v1188_v15 = vpop.f32.mrb[75].mxu0 }
 0x187   : > { %v4466_v29 = vpop.eup %4465  ;;  %v1908_v60 = vadd.f32 1.0, %v4464_v54  ;;  %4485 = vpow2.f32 %v3298_v36  ;;  %v1189_v3 = vadd.f32 %v5423_v18, %v1188_v15 }
 0x188   : > { %v5503_v22 = vpop.eup %4467  ;;  %v1907_v32 = vadd.f32 1.0, %v4466_v29  ;;  %4487 = vpow2.f32 %v3297_v10  ;;  %v3300_v34 = vmul.f32 -1.442695, %v1194_v2 }
 0x189   : > { %v5505_v63 = vpop.eup %4469  ;;  %4489 = vrcp.f32 %v1908_v60  ;;  %v3299_v58 = vmul.f32 -1.442695, %v1189_v3  ;;  %v3891_v7 = vpop.f32.mrb[76].mxu0  ;;  %v4059_v40 = vpack.c.bf16 %v5495_v16, %v5503_v22 }
 0x18a   : > { %v4472_v44 = vpop.eup %4471  ;;  %4491 = vrcp.f32 %v1907_v32  ;;  %v1204_v47 = vadd.f32 %v5423_v18, %v3891_v7  ;;  %v1198_v55 = vpop.f32.mrb[77].mxu0 }
 0x18b   : > { %v4474_v41 = vpop.eup %4473  ;;  %v1910_v43 = vadd.f32 1.0, %v4472_v44  ;;  %4493 = vpow2.f32 %v3300_v34  ;;  %v1199_v45 = vadd.f32 %v5423_v18, %v1198_v55 }
 0x18c   : > { %v5511_v5 = vpop.eup %4475  ;;  %v1909_v35 = vadd.f32 1.0, %v4474_v41  ;;  %4495 = vpow2.f32 %v3299_v58  ;;  %v3302_v49 = vmul.f32 -1.442695, %v1204_v47  ;;  %4046 = vmatpush3.bf16.xpose.msk.msra.mxu1 %vm5270_vm2, %v4044_v20 }
 0x18d   : > { %v5518_v51 = vpop.eup %4477  ;;  %4497 = vrcp.f32 %v1910_v43  ;;  %v3301_v62 = vmul.f32 -1.442695, %v1199_v45  ;;  %4049 = vmatprep.subr.msk.bf16.mxu1 %vm5270_vm2, %v4047_v4  ;;  %v3894_v6 = vpop.f32.mrb[78].mxu0  ;;  %v4065_v31 = vpack.c.bf16 %v5505_v63, %v5511_v5 }
 0x18e   : > { %v4480_v59 = vpop.eup %4479  ;;  %4499 = vrcp.f32 %v1909_v35  ;;  %v1214_v52 = vadd.f32 %v5423_v18, %v3894_v6  ;;  %v1208_v56 = vpop.f32.mrb[79].mxu0 }
 0x18f   : > { %v5525_v25 = vpop.eup %4481  ;;  %v1912_v12 = vadd.f32 1.0, %v4480_v59  ;;  %4501 = vpow2.f32 %v3302_v49  ;;  %v1209_v20 = vadd.f32 %v5423_v18, %v1208_v56 }
 0x190   : > { %v4484_v23 = vpop.eup %4483  ;;  %4503 = vpow2.f32 %v3301_v62  ;;  %v3304_v27 = vmul.f32 -1.442695, %v1214_v52  ;;  %v4074_v33 = vpack.c.bf16 %v5518_v51, %v5525_v25 }
 0x191   : > { %v4486_v17 = vpop.eup %4485  ;;  %4505 = vrcp.f32 %v1912_v12  ;;  %v1911_v39 = vadd.f32 1.0, %v4484_v23  ;;  %v3897_v42 = vpop.f32.mrb[80].mxu0  ;;  %v3303_v11 = vmul.f32 -1.442695, %v1209_v20 }
 0x192   : > { %v4488_v61 = vpop.eup %4487  ;;  %v1914_v4 = vadd.f32 1.0, %v4486_v17  ;;  %4507 = vpow2.f32 %v3304_v27  ;;  %v1224_v48 = vadd.f32 %v5423_v18, %v3897_v42  ;;  %v1218_v36 = vpop.f32.mrb[81].mxu0 }
 0x193   : > { %v5531_v10 = vpop.eup %4489  ;;  %4509 = vrcp.f32 %v1911_v39  ;;  %v1913_v24 = vadd.f32 1.0, %v4488_v61  ;;  %v1219_v54 = vadd.f32 %v5423_v18, %v1218_v36 }
 0x194   : > { %v5534_v2 = vpop.eup %4491  ;;  %4511 = vrcp.f32 %v1914_v4  ;;  %v3306_v15 = vmul.f32 -1.442695, %v1224_v48  ;;  %4052 = vmatpush3.bf16.xpose.msk.msra.mxu1 %vm5270_vm2, %v4050_v38 }
 0x195   : > { %v4494_v29 = vpop.eup %4493  ;;  %4513 = vrcp.f32 %v1913_v24  ;;  %4055 = vmatprep.subr.msk.bf16.mxu1 %vm5270_vm2, %v4053_v26  ;;  %v3900_v60 = vpop.f32.mrb[82].mxu0  ;;  %v4080_v3 = vpack.c.bf16 %v5531_v10, %v5534_v2  ;;  %v3305_v58 = vmul.f32 -1.442695, %v1219_v54 }
 0x196   : > { %v4496_v32 = vpop.eup %4495  ;;  %v1916_v34 = vadd.f32 1.0, %v4494_v29  ;;  %4515 = vpow2.f32 %v3303_v11  ;;  %v1234_v21 = vadd.f32 %v5423_v18, %v3900_v60  ;;  %v1228_v37 = vpop.f32.mrb[83].mxu0 }
 0x197   : > { %v5549_v38 = vpop.eup %4497  ;;  %v1915_v7 = vadd.f32 1.0, %v4496_v32  ;;  %4517 = vpow2.f32 %v3306_v15  ;;  %v1229_v9 = vadd.f32 %v5423_v18, %v1228_v37 }
 0x198   : > { %v5552_v30 = vpop.eup %4499  ;;  %4519 = vrcp.f32 %v1916_v34  ;;  %v3308_v26 = vmul.f32 -1.442695, %v1234_v21 }
 0x199   : > { %v4502_v44 = vpop.eup %4501  ;;  %4521 = vrcp.f32 %v1915_v7  ;;  %v3903_v47 = vpop.f32.mrb[84].mxu0  ;;  %v4086_v55 = vpack.c.bf16 %v5549_v38, %v5552_v30  ;;  %v3307_v45 = vmul.f32 -1.442695, %v1229_v9 }
 0x19a   : > { %v4504_v41 = vpop.eup %4503  ;;  %v1918_v43 = vadd.f32 1.0, %v4502_v44  ;;  %4523 = vpow2.f32 %v3305_v58  ;;  %v1244_v35 = vadd.f32 %v5423_v18, %v3903_v47  ;;  %v1238_v49 = vpop.f32.mrb[85].mxu0 }
 0x19b   : > { %v5557_v62 = vpop.eup %4505  ;;  %v1917_v6 = vadd.f32 1.0, %v4504_v41  ;;  %4525 = vpow2.f32 %v3308_v26  ;;  %v1239_v59 = vadd.f32 %v5423_v18, %v1238_v49 }
 0x19c   : > { %v4508_v52 = vpop.eup %4507  ;;  %4527 = vrcp.f32 %v1918_v43  ;;  %v3310_v56 = vmul.f32 -1.442695, %v1244_v35  ;;  %4058 = vmatpush3.bf16.xpose.msk.msra.mxu1 %vm5270_vm2, %v4056_v50 }
 0x19d   : > { %v5565_v12 = vpop.eup %4509  ;;  %4529 = vrcp.f32 %v1917_v6  ;;  %v1920_v20 = vadd.f32 1.0, %v4508_v52  ;;  %v3309_v23 = vmul.f32 -1.442695, %v1239_v59  ;;  %4061 = vmatprep.subr.msk.bf16.mxu1 %vm5270_vm2, %v4059_v40  ;;  %v3906_v27 = vpop.f32.mrb[86].mxu0 }
 0x19e   : > { %v5572_v17 = vpop.eup %4511  ;;  %4531 = vpow2.f32 %v3307_v45  ;;  %v1254_v46 = vadd.f32 %v5423_v18, %v3906_v27  ;;  %v1248_v53 = vpop.f32.mrb[87].mxu0  ;;  %v4092_v50 = vpack.c.bf16 %v5557_v62, %v5565_v12 }
 0x19f   : > { %v5577_v39 = vpop.eup %4513  ;;  %4533 = vrcp.f32 %v1920_v20  ;;  %v1249_v42 = vadd.f32 %v5423_v18, %v1248_v53 }
 0x1a0   : > { %v4516_v61 = vpop.eup %4515  ;;  %4535 = vpow2.f32 %v3310_v56  ;;  %v3312_v16 = vmul.f32 -1.442695, %v1254_v46  ;;  %v4098_v22 = vpack.c.bf16 %v5572_v17, %v5577_v39  ;;  %v5732_v17 = vld [vmem:[%s5915_s2] ss:$0 sm:$0xff] }
 0x1a1   : > { %v4518_v40 = vpop.eup %4517  ;;  %v1919_v4 = vadd.f32 1.0, %v4516_v61  ;;  %4537 = vpow2.f32 %v3309_v23  ;;  %v3311_v11 = vmul.f32 -1.442695, %v1249_v42  ;;  %v3909_v48 = vpop.f32.mrb[88].mxu0 }
 0x1a2   : > { %v5582_v36 = vpop.eup %4519  ;;  %v1922_v24 = vadd.f32 1.0, %v4518_v40  ;;  %4539 = vpow2.f32 %v3312_v16  ;;  %v1264_v54 = vadd.f32 %v5423_v18, %v3909_v48  ;;  %v1258_v15 = vpop.f32.mrb[89].mxu0 }
 0x1a3   : > { %v5585_v29 = vpop.eup %4521  ;;  %4541 = vrcp.f32 %v1919_v4  ;;  %v1259_v60 = vadd.f32 %v5423_v18, %v1258_v15 }
 0x1a4   : > { %v4524_v32 = vpop.eup %4523  ;;  %4543 = vrcp.f32 %v1922_v24  ;;  %v3314_v34 = vmul.f32 -1.442695, %v1264_v54  ;;  %4064 = vmatpush3.bf16.xpose.msk.msra.mxu1 %vm5270_vm2, %v4062_v14  ;;  %v4104_v58 = vpack.c.bf16 %v5582_v36, %v5585_v29 }
 0x1a5   : > { %v4526_v21 = vpop.eup %4525  ;;  %v1921_v37 = vadd.f32 1.0, %v4524_v32  ;;  %4545 = vpow2.f32 %v3311_v11  ;;  %v3313_v7 = vmul.f32 -1.442695, %v1259_v60  ;;  %4067 = vmatprep.subr.msk.bf16.mxu1 %vm5270_vm2, %v4065_v31  ;;  %v3912_v9 = vpop.f32.mrb[90].mxu0 }
 0x1a6   : > { %v5600_v26 = vpop.eup %4527  ;;  %v1924_v1 = vadd.f32 1.0, %v4526_v21  ;;  %4547 = vpow2.f32 %v3314_v34  ;;  %v1274_v0 = vadd.f32 %v5423_v18, %v3912_v9  ;;  %v1268_v14 = vpop.f32.mrb[91].mxu0 }
 0x1a7   : > { %v5603_v44 = vpop.eup %4529  ;;  %4549 = vrcp.f32 %v1921_v37  ;;  %v1269_v47 = vadd.f32 %v5423_v18, %v1268_v14 }
 0x1a8   : > { %v4532_v41 = vpop.eup %4531  ;;  %4551 = vrcp.f32 %v1924_v1  ;;  %v3316_v43 = vmul.f32 -1.442695, %v1274_v0  ;;  %v4110_v63 = vpack.c.bf16 %v5600_v26, %v5603_v44 }
 0x1a9   : > { %v5608_v5 = vpop.eup %4533  ;;  %v1923_v31 = vadd.f32 1.0, %v4532_v41  ;;  %4553 = vpow2.f32 %v3313_v7  ;;  %v3315_v45 = vmul.f32 -1.442695, %v1269_v47  ;;  %v3915_v35 = vpop.f32.mrb[92].mxu0 }
 0x1aa   : > { %v4536_v49 = vpop.eup %4535  ;;  %4555 = vpow2.f32 %v3316_v43  ;;  %v1284_v6 = vadd.f32 %v5423_v18, %v3915_v35  ;;  %v1278_v59 = vpop.f32.mrb[93].mxu0 }
 0x1ab   : > { %v4538_v52 = vpop.eup %4537  ;;  %4557 = vrcp.f32 %v1923_v31  ;;  %v1926_v56 = vadd.f32 1.0, %v4536_v49  ;;  %v1279_v20 = vadd.f32 %v5423_v18, %v1278_v59 }
 0x1ac   : > { %v4540_v23 = vpop.eup %4539  ;;  %v1925_v27 = vadd.f32 1.0, %v4538_v52  ;;  %4559 = vpow2.f32 %v3315_v45  ;;  %v3318_v46 = vmul.f32 -1.442695, %v1284_v6  ;;  %4070 = vmatpush3.bf16.xpose.msk.msra.mxu1 %vm5270_vm2, %v4068_v28 }
 0x1ad   : > { %v5617_v53 = vpop.eup %4541  ;;  %4561 = vrcp.f32 %v1926_v56  ;;  %v1928_v42 = vadd.f32 1.0, %v4540_v23  ;;  %v3317_v61 = vmul.f32 -1.442695, %v1279_v20  ;;  %v3918_v16 = vpop.f32.mrb[94].mxu0 }
 0x1ae   : > { %v4544_v40 = vpop.eup %4543  ;;  %4563 = vrcp.f32 %v1925_v27  ;;  %v1294_v4 = vadd.f32 %v5423_v18, %v3918_v16  ;;  %v1288_v11 = vpop.f32.mrb[95].mxu0  ;;  %v4116_v48 = vpack.c.bf16 %v5608_v5, %v5617_v53 }
 0x1af   : > { %v4546_v24 = vpop.eup %4545  ;;  %4565 = vrcp.f32 %v1928_v42  ;;  %v1289_v13 = vadd.f32 %v5423_v18, %v1288_v11 }
 0x1b0   : > { %v4548_v19 = vpop.eup %4547  ;;  %v1927_v28 = vadd.f32 1.0, %v4546_v24  ;;  %4567 = vpow2.f32 %v3318_v46  ;;  %v3320_v54 = vmul.f32 -1.442695, %v1294_v4 }
 0x1b1   : > { %v4550_v15 = vpop.eup %4549  ;;  %v1930_v60 = vadd.f32 1.0, %v4548_v19  ;;  %4569 = vpow2.f32 %v3317_v61  ;;  %v3319_v32 = vmul.f32 -1.442695, %v1289_v13  ;;  %v3921_v34 = vpop.f32.mrb[96].mxu0 }
 0x1b2   : > { %v4552_v21 = vpop.eup %4551  ;;  %4571 = vrcp.f32 %v1927_v28  ;;  %v1304_v37 = vadd.f32 %v5423_v18, %v3921_v34  ;;  %v4071_v7 = vpack.c.bf16 %v4544_v40, %v4550_v15  ;;  %v1298_v9 = vpop.f32.mrb[97].mxu0 }
 0x1b3   : > { %v4554_v1 = vpop.eup %4553  ;;  %4573 = vrcp.f32 %v1930_v60  ;;  %3698 = vmatmul.mubr.msk.f32.vlgmr.msra.gmra.mrb[2].mxu1 %vm2236_vm1, %v5454_v57  ;;  %v1299_v0 = vadd.f32 %v5423_v18, %v1298_v9 }
 0x1b4   : > { %v4556_v14 = vpop.eup %4555  ;;  %v1929_v47 = vadd.f32 1.0, %v4554_v1  ;;  %4575 = vpow2.f32 %v3320_v54  ;;  %v3322_v41 = vmul.f32 -1.442695, %v1304_v37  ;;  %4073 = vmatprep.subr.msk.bf16.mxu1 %vm5270_vm2, %v4071_v7  ;;  %3731 = vmatprep.mubr.msk.f32.mxu1 %vm2236_vm1, %v5454_v57 }
 0x1b5   : > { %v4558_v43 = vpop.eup %4557  ;;  %v1932_v31 = vadd.f32 1.0, %v4556_v14  ;;  %4577 = vpow2.f32 %v3319_v32  ;;  %4076 = vmatpush3.bf16.xpose.msk.msra.mxu1 %vm5270_vm2, %v4074_v33  ;;  %v3924_v45 = vpop.f32.mrb[98].mxu0  ;;  %v3321_v49 = vmul.f32 -1.442695, %v1299_v0 }
 0x1b6   : > { %v4560_v35 = vpop.eup %4559  ;;  %4579 = vrcp.f32 %v1929_v47  ;;  %v1314_v6 = vadd.f32 %v5423_v18, %v3924_v45  ;;  %v4077_v59 = vpack.c.bf16 %v4552_v21, %v4558_v43  ;;  %v1308_v52 = vpop.f32.mrb[99].mxu0 }
 0x1b7   : > { %v4562_v56 = vpop.eup %4561  ;;  %4581 = vrcp.f32 %v1932_v31  ;;  %v1931_v57 = vadd.f32 1.0, %v4560_v35  ;;  %v1309_v20 = vadd.f32 %v5423_v18, %v1308_v52 }
 0x1b8   : > { %v4564_v23 = vpop.eup %4563  ;;  %4583 = vpow2.f32 %v3322_v41  ;;  %v3324_v27 = vmul.f32 -1.442695, %v1314_v6  ;;  %4079 = vmatprep.subr.msk.bf16.mxu1 %vm5270_vm2, %v4077_v59 }
 0x1b9   : > { %v5640_v51 = vpop.eup %4565  ;;  %4585 = vrcp.f32 %v1931_v57  ;;  %v3323_v25 = vmul.f32 -1.442695, %v1309_v20  ;;  %v3927_v33 = vpop.f32.mrb[100].mxu0  ;;  %v4083_v46 = vpack.c.bf16 %v4562_v56, %v4564_v23 }
 0x1ba   : > { %v4568_v42 = vpop.eup %4567  ;;  %4587 = vpow2.f32 %v3321_v49  ;;  %v1324_v61 = vadd.f32 %v5423_v18, %v3927_v33  ;;  %v1318_v16 = vpop.f32.mrb[101].mxu0 }
 0x1bb   : > { %v4570_v40 = vpop.eup %4569  ;;  %v1934_v4 = vadd.f32 1.0, %v4568_v42  ;;  %4589 = vpow2.f32 %v3324_v27  ;;  %v1319_v11 = vadd.f32 %v5423_v18, %v1318_v16 }
 0x1bc   : > { %v4572_v24 = vpop.eup %4571  ;;  %v1933_v13 = vadd.f32 1.0, %v4570_v40  ;;  %4591 = vpow2.f32 %v3323_v25  ;;  %v3326_v19 = vmul.f32 -1.442695, %v1324_v61 }
 0x1bd   : > { %v5644_v28 = vpop.eup %4573  ;;  %4593 = vrcp.f32 %v1934_v4  ;;  %v3325_v54 = vmul.f32 -1.442695, %v1319_v11  ;;  %4082 = vmatpush3.bf16.xpose.msk.msra.mxu1 %vm5270_vm2, %v4080_v3  ;;  %v3930_v15 = vpop.f32.mrb[102].mxu0  ;;  %v4089_v60 = vpack.c.bf16 %v5640_v51, %v4572_v24 }
 0x1be   : > { %v4576_v32 = vpop.eup %4575  ;;  %4595 = vrcp.f32 %v1933_v13  ;;  %4085 = vmatprep.subr.msk.bf16.mxu1 %vm5270_vm2, %v4083_v46  ;;  %v1334_v34 = vadd.f32 %v5423_v18, %v3930_v15  ;;  %v1328_v21 = vpop.f32.mrb[103].mxu0 }
 0x1bf   : > { %v4578_v37 = vpop.eup %4577  ;;  %v1936_v7 = vadd.f32 1.0, %v4576_v32  ;;  %4597 = vpow2.f32 %v3326_v19  ;;  %v1329_v9 = vadd.f32 %v5423_v18, %v1328_v21 }
 0x1c0   : > { %v5656_v10 = vpop.eup %4579  ;;  %v1935_v2 = vadd.f32 1.0, %v4578_v37  ;;  %4599 = vpow2.f32 %v3325_v54  ;;  %v3328_v3 = vmul.f32 -1.442695, %v1334_v34 }
 0x1c1   : > { %v5658_v1 = vpop.eup %4581  ;;  %4601 = vrcp.f32 %v1936_v7  ;;  %v3327_v0 = vmul.f32 -1.442695, %v1329_v9  ;;  %v3933_v14 = vpop.f32.mrb[104].mxu0  ;;  %v4095_v47 = vpack.c.bf16 %v5644_v28, %v5656_v10 }
 0x1c2   : > { %v4584_v41 = vpop.eup %4583  ;;  %4603 = vrcp.f32 %v1935_v2  ;;  %v1344_v43 = vadd.f32 %v5423_v18, %v3933_v14  ;;  %v1338_v31 = vpop.f32.mrb[105].mxu0 }
 0x1c3   : > { %v5663_v45 = vpop.eup %4585  ;;  %v1938_v35 = vadd.f32 1.0, %v4584_v41  ;;  %4605 = vpow2.f32 %v3328_v3  ;;  %v1339_v49 = vadd.f32 %v5423_v18, %v1338_v31 }
 0x1c4   : > { %v4588_v6 = vpop.eup %4587  ;;  %4607 = vpow2.f32 %v3327_v0  ;;  %v3330_v59 = vmul.f32 -1.442695, %v1344_v43  ;;  %v4101_v52 = vpack.c.bf16 %v5658_v1, %v5663_v45 }
 0x1c5   : > { %v4590_v56 = vpop.eup %4589  ;;  %4609 = vrcp.f32 %v1938_v35  ;;  %v1937_v57 = vadd.f32 1.0, %v4588_v6  ;;  %4088 = vmatpush3.bf16.xpose.msk.msra.mxu1 %vm5270_vm2, %v4086_v55  ;;  %v3936_v20 = vpop.f32.mrb[106].mxu0  ;;  %v3329_v51 = vmul.f32 -1.442695, %v1339_v49 }
 0x1c6   : > { %v4592_v23 = vpop.eup %4591  ;;  %v1940_v27 = vadd.f32 1.0, %v4590_v56  ;;  %4611 = vpow2.f32 %v3330_v59  ;;  %4091 = vmatprep.subr.msk.bf16.mxu1 %vm5270_vm2, %v4089_v60  ;;  %v1354_v25 = vadd.f32 %v5423_v18, %v3936_v20  ;;  %v1348_v33 = vpop.f32.mrb[107].mxu0 }
 0x1c7   : > { %v5676_v46 = vpop.eup %4593  ;;  %4613 = vrcp.f32 %v1937_v57  ;;  %v1939_v42 = vadd.f32 1.0, %v4592_v23  ;;  %v1349_v38 = vadd.f32 %v5423_v18, %v1348_v33 }
 0x1c8   : > { %v5679_v30 = vpop.eup %4595  ;;  %4615 = vrcp.f32 %v1940_v27  ;;  %v3332_v55 = vmul.f32 -1.442695, %v1354_v25 }
 0x1c9   : > { %v4598_v61 = vpop.eup %4597  ;;  %4617 = vrcp.f32 %v1939_v42  ;;  %v3939_v16 = vpop.f32.mrb[108].mxu0  ;;  %v4107_v40 = vpack.c.bf16 %v5676_v46, %v5679_v30  ;;  %v3331_v24 = vmul.f32 -1.442695, %v1349_v38 }
 0x1ca   : > { %v4600_v4 = vpop.eup %4599  ;;  %v1942_v11 = vadd.f32 1.0, %v4598_v61  ;;  %4619 = vpow2.f32 %v3329_v51  ;;  %v1364_v13 = vadd.f32 %v5423_v18, %v3939_v16  ;;  %v1358_v19 = vpop.f32.mrb[109].mxu0 }
 0x1cb   : > { %v5684_v28 = vpop.eup %4601  ;;  %v1941_v54 = vadd.f32 1.0, %v4600_v4  ;;  %4621 = vpow2.f32 %v3332_v55  ;;  %v1359_v15 = vadd.f32 %v5423_v18, %v1358_v19 }
 0x1cc   : > { %v5687_v60 = vpop.eup %4603  ;;  %4623 = vrcp.f32 %v1942_v11  ;;  %v3334_v32 = vmul.f32 -1.442695, %v1364_v13 }
 0x1cd   : > { %v4606_v34 = vpop.eup %4605  ;;  %4625 = vrcp.f32 %v1941_v54  ;;  %4094 = vmatpush3.bf16.xpose.msk.msra.mxu1 %vm5270_vm2, %v4092_v50  ;;  %v3942_v21 = vpop.f32.mrb[110].mxu0  ;;  %v4113_v37 = vpack.c.bf16 %v5684_v28, %v5687_v60  ;;  %v3333_v10 = vmul.f32 -1.442695, %v1359_v15 }
 0x1ce   : > { %v4608_v7 = vpop.eup %4607  ;;  %v1944_v9 = vadd.f32 1.0, %v4606_v34  ;;  %4627 = vpow2.f32 %v3331_v24  ;;  %4097 = vmatprep.subr.msk.bf16.mxu1 %vm5270_vm2, %v4095_v47  ;;  %v1374_v2 = vadd.f32 %v5423_v18, %v3942_v21  ;;  %v1368_v3 = vpop.f32.mrb[111].mxu0 }
 0x1cf   : > { %v5699_v0 = vpop.eup %4609  ;;  %v1943_v62 = vadd.f32 1.0, %v4608_v7  ;;  %4629 = vpow2.f32 %v3334_v32  ;;  %v1369_v12 = vadd.f32 %v5423_v18, %v1368_v3 }
 0x1d0   : > { %v4612_v50 = vpop.eup %4611  ;;  %4631 = vrcp.f32 %v1944_v9  ;;  %v3336_v14 = vmul.f32 -1.442695, %v1374_v2 }
 0x1d1   : > { %v5702_v41 = vpop.eup %4613  ;;  %4633 = vrcp.f32 %v1943_v62  ;;  %v1946_v43 = vadd.f32 1.0, %v4612_v50  ;;  %v3335_v31 = vmul.f32 -1.442695, %v1369_v12  ;;  %v3945_v35 = vpop.f32.mrb[112].mxu0 }
 0x1d2   : > { %v5704_v49 = vpop.eup %4615  ;;  %4635 = vpow2.f32 %v3333_v10  ;;  %v1384_v47 = vadd.f32 %v5423_v18, %v3945_v35  ;;  %v1378_v6 = vpop.f32.mrb[113].mxu0  ;;  %v4122_v59 = vpack.c.bf16 %v5699_v0, %v5702_v41 }
 0x1d3   : > { %v5709_v56 = vpop.eup %4617  ;;  %4637 = vrcp.f32 %v1946_v43  ;;  %v1379_v57 = vadd.f32 %v5423_v18, %v1378_v6 }
 0x1d4   : > { %v4620_v20 = vpop.eup %4619  ;;  %4639 = vpow2.f32 %v3336_v14  ;;  %v3338_v23 = vmul.f32 -1.442695, %v1384_v47  ;;  %v4128_v27 = vpack.c.bf16 %v5704_v49, %v5709_v56 }
 0x1d5   : > { %v4622_v51 = vpop.eup %4621  ;;  %v1945_v25 = vadd.f32 1.0, %v4620_v20  ;;  %4641 = vpow2.f32 %v3335_v31  ;;  %v3337_v33 = vmul.f32 -1.442695, %v1379_v57  ;;  %4100 = vmatpush3.bf16.xpose.msk.msra.mxu1 %vm5270_vm2, %v4098_v22  ;;  %v3948_v42 = vpop.f32.mrb[114].mxu0 }
 0x1d6   : > { %v5719_v38 = vpop.eup %4623  ;;  %v1948_v55 = vadd.f32 1.0, %v4622_v51  ;;  %4643 = vpow2.f32 %v3338_v23  ;;  %4103 = vmatprep.subr.msk.bf16.mxu1 %vm5270_vm2, %v4101_v52  ;;  %v1394_v61 = vadd.f32 %v5423_v18, %v3948_v42  ;;  %v1388_v16 = vpop.f32.mrb[115].mxu0 }
 0x1d7   : > { %v5727_v4 = vpop.eup %4625  ;;  %4645 = vrcp.f32 %v1945_v25  ;;  %v1389_v39 = vadd.f32 %v5732_v17, %v1388_v16 }
 0x1d8   : > { %v4628_v22 = vpop.eup %4627  ;;  %4647 = vrcp.f32 %v1948_v55  ;;  %v3340_v11 = vmul.f32 -1.442695, %v1394_v61  ;;  %v4134_v1 = vpack.c.bf16 %v5719_v38, %v5727_v4  ;;  %v2232_v38 = vlaneseq }
 0x1d9   : > { %v4630_v45 = vpop.eup %4629  ;;  %v1947_v52 = vadd.f32 1.0, %v4628_v22  ;;  %4649 = vpow2.f32 %v3337_v33  ;;  %v3339_v18 = vmul.f32 -1.442695, %v1389_v39  ;;  %v3951_v24 = vpop.f32.mrb[116].mxu0 }
 0x1da   : > { %v5737_v13 = vpop.eup %4631  ;;  %v1950_v19 = vadd.f32 1.0, %v4630_v45  ;;  %4651 = vpow2.f32 %v3340_v11  ;;  %v1404_v54 = vadd.f32 %v5732_v17, %v3951_v24  ;;  %v1398_v15 = vpop.f32.mrb[117].mxu0  ;;  %v2233_v4 = vshrl.u32 %v2232_v38, 7 }
 0x1db   : > { %v5740_v32 = vpop.eup %4633  ;;  %4653 = vrcp.f32 %v1947_v52  ;;  %v1399_v34 = vadd.f32 %v5732_v17, %v1398_v15 }
 0x1dc   : > { %v4636_v21 = vpop.eup %4635  ;;  %4655 = vrcp.f32 %v1950_v19  ;;  %v3342_v7 = vmul.f32 -1.442695, %v1404_v54  ;;  %v4140_v9 = vpack.c.bf16 %v5737_v13, %v5740_v32  ;;  %v2230_v13 = vpop.permute.xlu0 %2229 }
 0x1dd   : > { %v5745_v10 = vpop.eup %4637  ;;  %v1949_v2 = vadd.f32 1.0, %v4636_v21  ;;  %4657 = vpow2.f32 %v3339_v18  ;;  %4106 = vmatpush3.bf16.xpose.msk.msra.mxu1 %vm5270_vm2, %v4104_v58  ;;  %v3341_v3 = vmul.f32 -1.442695, %v1399_v34  ;;  %v3954_v62 = vpop.f32.mrb[118].mxu0 }
 0x1de   : > { %v4640_v12 = vpop.eup %4639  ;;  %4109 = vmatprep.subr.msk.bf16.mxu1 %vm5270_vm2, %v4107_v40  ;;  %4659 = vpow2.f32 %v3342_v7  ;;  %v1414_v50 = vadd.f32 %v5732_v17, %v3954_v62  ;;  %v1408_v14 = vpop.f32.mrb[119].mxu0 }
 0x1df   : > { %v4642_v43 = vpop.eup %4641  ;;  %4661 = vrcp.f32 %v1949_v2  ;;  %v1952_v31 = vadd.f32 1.0, %v4640_v12  ;;  %v1409_v36 = vadd.f32 %v5732_v17, %v1408_v14 }
 0x1e0   : > { %v4644_v29 = vpop.eup %4643  ;;  %v1951_v58 = vadd.f32 1.0, %v4642_v43  ;;  %4663 = vpow2.f32 %v3341_v3  ;;  %v3344_v35 = vmul.f32 -1.442695, %v1414_v50 }
 0x1e1   : > { %v5759_v47 = vpop.eup %4645  ;;  %4665 = vrcp.f32 %v1952_v31  ;;  %v1954_v46 = vadd.f32 1.0, %v4644_v29  ;;  %v3343_v30 = vmul.f32 -1.442695, %v1409_v36  ;;  %v3957_v6 = vpop.f32.mrb[120].mxu0 }
 0x1e2   : > { %v5761_v40 = vpop.eup %4647  ;;  %4667 = vrcp.f32 %v1951_v58  ;;  %v1424_v57 = vadd.f32 %v5732_v17, %v3957_v6  ;;  %v1418_v20 = vpop.f32.mrb[121].mxu0  ;;  %v4146_v23 = vpack.c.bf16 %v5745_v10, %v5759_v47 }
 0x1e3   : > { %v4650_v51 = vpop.eup %4649  ;;  %4669 = vrcp.f32 %v1954_v46  ;;  %v1419_v25 = vadd.f32 %v5732_v17, %v1418_v20 }
 0x1e4   : > { %v4652_v33 = vpop.eup %4651  ;;  %v1953_v42 = vadd.f32 1.0, %v4650_v51  ;;  %4671 = vpow2.f32 %v3344_v35  ;;  %v3346_v55 = vmul.f32 -1.442695, %v1424_v57 }
 0x1e5   : > { %v5767_v61 = vpop.eup %4653  ;;  %v1956_v16 = vadd.f32 1.0, %v4652_v33  ;;  %4112 = vmatpush3.bf16.xpose.msk.msra.mxu1 %vm5270_vm2, %v4110_v63  ;;  %4673 = vpow2.f32 %v3343_v30  ;;  %v3345_v39 = vmul.f32 -1.442695, %v1419_v25  ;;  %v3960_v22 = vpop.f32.mrb[122].mxu0 }
 0x1e6   : > { %v5774_v11 = vpop.eup %4655  ;;  %4675 = vrcp.f32 %v1953_v42  ;;  %4115 = vmatprep.subr.msk.bf16.mxu1 %vm5270_vm2, %v4113_v37  ;;  %v1434_v45 = vadd.f32 %v5732_v17, %v3960_v22  ;;  %v1428_v52 = vpop.f32.mrb[123].mxu0  ;;  %v4152_v26 = vpack.c.bf16 %v5761_v40, %v5767_v61 }
 0x1e7   : > { %v4658_v44 = vpop.eup %4657  ;;  %4677 = vrcp.f32 %v1956_v16  ;;  %v1429_v63 = vadd.f32 %v5732_v17, %v1428_v52 }
 0x1e8   : > { %v4660_v18 = vpop.eup %4659  ;;  %v1955_v24 = vadd.f32 1.0, %v4658_v44  ;;  %4679 = vpow2.f32 %v3346_v55  ;;  %v3348_v19 = vmul.f32 -1.442695, %v1434_v45 }
 0x1e9   : > { %v5785_v54 = vpop.eup %4661  ;;  %v1958_v28 = vadd.f32 1.0, %v4660_v18  ;;  %4681 = vpow2.f32 %v3345_v39  ;;  %v3963_v60 = vpop.f32.mrb[124].mxu0  ;;  %v3347_v15 = vmul.f32 -1.442695, %v1429_v63 }
 0x1ea   : > { %v4664_v37 = vpop.eup %4663  ;;  %4683 = vrcp.f32 %v1955_v24  ;;  %v1444_v34 = vadd.f32 %v5732_v17, %v3963_v60  ;;  %v1438_v21 = vpop.f32.mrb[125].mxu0  ;;  %v4158_v7 = vpack.c.bf16 %v5774_v11, %v5785_v54 }
 0x1eb   : > { %v5790_v2 = vpop.eup %4665  ;;  %4685 = vrcp.f32 %v1958_v28  ;;  %v1957_v3 = vadd.f32 1.0, %v4664_v37  ;;  %v1439_v62 = vadd.f32 %v5732_v17, %v1438_v21 }
 0x1ec   : > { %v5793_v12 = vpop.eup %4667  ;;  %4687 = vpow2.f32 %v3348_v19  ;;  %v3350_v50 = vmul.f32 -1.442695, %v1444_v34 }
 0x1ed   : > { %v4670_v14 = vpop.eup %4669  ;;  %4689 = vrcp.f32 %v1957_v3  ;;  %4118 = vmatpush3.bf16.xpose.msk.msra.mxu1 %vm5270_vm2, %v4116_v48  ;;  %v3349_v43 = vmul.f32 -1.442695, %v1439_v62  ;;  %v3966_v31 = vpop.f32.mrb[126].mxu0  ;;  %v4164_v36 = vpack.c.bf16 %v5790_v2, %v5793_v12 }
 0x1ee   : > { %v4672_v29 = vpop.eup %4671  ;;  %4691 = vpow2.f32 %v3347_v15  ;;  %v1454_v58 = vadd.f32 %v5732_v17, %v3966_v31  ;;  %v1448_v35 = vpop.f32.mrb[127].mxu0 }
 0x1ef   : > { %v4674_v46 = vpop.eup %4673  ;;  %v1960_v30 = vadd.f32 1.0, %v4672_v29  ;;  %4693 = vpow2.f32 %v3350_v50  ;;  %v1449_v6 = vadd.f32 %v5732_v17, %v1448_v35  ;;  %v4756_v17 = vld [vmem:[%s5916_s3] sm:$0x1] }
 0x1f0   : > { %v4676_v57 = vpop.eup %4675  ;;  %v1959_v5 = vadd.f32 1.0, %v4674_v46  ;;  %4695 = vpow2.f32 %v3349_v43  ;;  %v3352_v53 = vmul.f32 -1.442695, %v1454_v58 }
 0x1f1   : > { %v4678_v48 = vpop.eup %4677  ;;  %4697 = vrcp.f32 %v1960_v30  ;;  %v4119_v20 = vpack.c.bf16 %v4670_v14, %v4676_v57  ;;  %v3351_v51 = vmul.f32 -1.442695, %v1449_v6 }
 0x1f2   : > { %v4680_v25 = vpop.eup %4679  ;;  %4699 = vrcp.f32 %v1959_v5 }
 0x1f3   : > { %v4682_v33 = vpop.eup %4681  ;;  %v1962_v42 = vadd.f32 1.0, %v4680_v25  ;;  %4121 = vmatprep.subr.msk.bf16.mxu1 %vm5270_vm2, %v4119_v20  ;;  %4701 = vpow2.f32 %v3352_v53 }
 0x1f4   : > { %v4684_v55 = vpop.eup %4683  ;;  %v1961_v16 = vadd.f32 1.0, %v4682_v33  ;;  %3732 = vmatmul.mubr.msk.f32.vlgmr.msra.gmra.mrb[4].mxu1 %vm2236_vm1, %v4756_v17  ;;  %4703 = vpow2.f32 %v3351_v51  ;;  %v4822_v33 = vmov 1966171168  }
 0x1f5   : > { %v4686_v39 = vpop.eup %4685  ;;  %4705 = vrcp.f32 %v1962_v42  ;;  %4124 = vmatpush3.bf16.xpose.msk.msra.mxu1 %vm5270_vm2, %v4122_v59  ;;  %v4125_v22 = vpack.c.bf16 %v4678_v48, %v4684_v55  ;;  %3765 = vmatprep.mubr.msk.f32.mxu1 %vm2236_vm1, %v4756_v17  ;;  %v2969_v42 = vunpack.c.l.s4 %v4822_v33 }
 0x1f6   : > { %v4688_v45 = vpop.eup %4687  ;;  %4707 = vrcp.f32 %v1961_v16 }
 0x1f7   : > { %v4690_v52 = vpop.eup %4689  ;;  %v1964_v44 = vadd.f32 1.0, %v4688_v45  ;;  %4127 = vmatprep.subr.msk.bf16.mxu1 %vm5270_vm2, %v4125_v22  ;;  %v2970_v55 = vunpack.c.0.s8 %v2969_v42 }
 0x1f8   : > { %v4692_v63 = vpop.eup %4691  ;;  %v4131_v18 = vpack.c.bf16 %v4686_v39, %v4690_v52 }
 0x1f9   : > { %v4694_v24 = vpop.eup %4693  ;;  %4709 = vrcp.f32 %v1964_v44  ;;  %v1963_v19 = vadd.f32 1.0, %v4692_v63 }
 0x1fa   : > { %v4696_v28 = vpop.eup %4695  ;;  %v1966_v0 = vadd.f32 1.0, %v4694_v24 }
 0x1fb   : > { %v4698_v41 = vpop.eup %4697  ;;  %4711 = vrcp.f32 %v1963_v19  ;;  %v1965_v59 = vadd.f32 1.0, %v4696_v28 }
 0x1fc   : > { %v4700_v60 = vpop.eup %4699  ;;  %4713 = vrcp.f32 %v1966_v0 }
 0x1fd   : > { %v4702_v37 = vpop.eup %4701  ;;  %4130 = vmatpush3.bf16.xpose.msk.msra.mxu1 %vm5270_vm2, %v4128_v27  ;;  %4715 = vrcp.f32 %v1965_v59  ;;  %v4137_v15 = vpack.c.bf16 %v4698_v41, %v4700_v60 }
 0x1fe   : > { %v4704_v34 = vpop.eup %4703  ;;  %4133 = vmatprep.subr.msk.bf16.mxu1 %vm5270_vm2, %v4131_v18  ;;  %v1968_v21 = vadd.f32 1.0, %v4702_v37 }
 0x1ff   : > { %v4706_v3 = vpop.eup %4705  ;;  %v1967_v62 = vadd.f32 1.0, %v4704_v34 }
 0x200   : > { %v4708_v50 = vpop.eup %4707  ;;  %4717 = vrcp.f32 %v1968_v21 }
 0x201   : > { %4719 = vrcp.f32 %v1967_v62  ;;  %v4143_v14 = vpack.c.bf16 %v4706_v3, %v4708_v50 }
 0x203   : > { %v4710_v43 = vpop.eup %4709 }
 0x205   : > { %v4712_v31 = vpop.eup %4711  ;;  %4136 = vmatpush3.bf16.xpose.msk.msra.mxu1 %vm5270_vm2, %v4134_v1  ;;  %v2234_v1 = vsub.s32 0, %v2233_v4 }
 0x206   : > { %v4714_v49 = vpop.eup %4713  ;;  %4139 = vmatprep.subr.msk.bf16.mxu1 %vm5270_vm2, %v4137_v15  ;;  %v4149_v56 = vpack.c.bf16 %v4710_v43, %v4712_v31 }
 0x207   : > { %v4716_v27 = vpop.eup %4715  ;;  %v2235_v32 = vrot.slane %v2230_v13, %v2234_v1 }
 0x208   : > { %v4155_v29 = vpack.c.bf16 %v4714_v49, %v4716_v27 }
 0x20a   : > { %v4718_v58 = vpop.eup %4717 }
 0x20b   : > { %v4720_v35 = vpop.eup %4719 }
 0x20c   : > { %v4161_v46 = vpack.c.bf16 %v4718_v58, %v4720_v35 }
 0x20d   : > { %4142 = vmatpush3.bf16.xpose.msk.msra.mxu1 %vm5270_vm2, %v4140_v9 }
 0x20e   : > { %4145 = vmatprep.subr.msk.bf16.mxu1 %vm5270_vm2, %v4143_v14 }
 0x215   : > { %4148 = vmatpush3.bf16.xpose.msk.msra.mxu1 %vm5270_vm2, %v4146_v23 }
 0x216   : > { %4151 = vmatprep.subr.msk.bf16.mxu1 %vm5270_vm2, %v4149_v56 }
 0x21d   : > { %4154 = vmatpush3.bf16.xpose.msk.msra.mxu1 %vm5270_vm2, %v4152_v26 }
 0x21e   : > { %4157 = vmatprep.subr.msk.bf16.mxu1 %vm5270_vm2, %v4155_v29 }
 0x225   : > { %4160 = vmatpush3.bf16.xpose.msk.msra.mxu1 %vm5270_vm2, %v4158_v7 }
 0x226   : > { %4163 = vmatprep.subr.msk.bf16.mxu1 %vm5270_vm2, %v4161_v46 }
 0x22d   : > { %4166 = vmatpush3.bf16.xpose.msk.msra.mxu1 %vm5270_vm2, %v4164_v36 }
 0x234   : > { %3766 = vmatmul.mubr.msk.f32.vlgmr.msra.gmra.mrb[6].mxu1 %vm2236_vm1, %v4756_v17  ;;  %v2973_v17 = vsub.s32 %v2970_v55, %v2233_v4 }
 0x246   : > { %v2690_v9 = vpop.f32.mrb[0].mxu1 }
 0x247   : > { %v2691_v10 = vadd.f32 %v2690_v9, %v2235_v32  ;;  %v2692_v47 = vpop.f32.mrb[1].mxu1 }
 0x248   : > { %v2693_v40 = vadd.f32 %v2692_v47, %v2235_v32 }
 0x249   : > { %v3485_v23 = vmul.f32 -1.442695, %v2691_v10 }
 0x24a   : > { %v3486_v61 = vmul.f32 -1.442695, %v2693_v40 }
 0x24b   : > { %4721 = vpow2.f32 %v3485_v23 }
 0x24c   : > { %4723 = vpow2.f32 %v3486_v61 }
 0x255   : > { %v4722_v11 = vpop.eup %4721 }
 0x256   : > { %v4724_v26 = vpop.eup %4723  ;;  %v2932_v54 = vadd.f32 1.0, %v4722_v11 }
 0x257   : > { %v2933_v8 = vadd.f32 1.0, %v4724_v26 }
 0x258   : > { %4725 = vrcp.f32 %v2932_v54 }
 0x259   : > { %4727 = vrcp.f32 %v2933_v8 }
 0x262   : > { %v4726_v7 = vpop.eup %4725 }
 0x263   : > { %v4728_v2 = vpop.eup %4727 }
 0x264   : > { %v2964_v12 = vcombine.low %v4726_v7, %v4728_v2 }
 0x266   : > { %v2974_v45 = vrot.slane %v2964_v12, %v2973_v17 }
 0x286   : > { %v2761_v36 = vpop.f32.mrb[2].mxu1 }
 0x287   : > { %v2762_v30 = vadd.f32 %v2761_v36, %v2235_v32  ;;  %v2763_v6 = vpop.f32.mrb[3].mxu1 }
 0x288   : > { %v2764_v57 = vadd.f32 %v2763_v6, %v2235_v32 }
 0x289   : > { %v3487_v5 = vmul.f32 -1.442695, %v2762_v30 }
 0x28a   : > { %v3488_v53 = vmul.f32 -1.442695, %v2764_v57 }
 0x28b   : > { %4729 = vpow2.f32 %v3487_v5 }
 0x28c   : > { %4731 = vpow2.f32 %v3488_v53 }
 0x295   : > { %v4730_v48 = vpop.eup %4729 }
 0x296   : > { %v4732_v20 = vpop.eup %4731  ;;  %v2934_v51 = vadd.f32 1.0, %v4730_v48 }
 0x297   : > { %v2935_v25 = vadd.f32 1.0, %v4732_v20 }
 0x298   : > { %4733 = vrcp.f32 %v2934_v51 }
 0x299   : > { %4735 = vrcp.f32 %v2935_v25 }
 0x2a2   : > { %v4734_v16 = vpop.eup %4733 }
 0x2a3   : > { %v4736_v39 = vpop.eup %4735 }
 0x2a4   : > { %v2965_v22 = vcombine.low %v4734_v16, %v4736_v39 }
 0x2a6   : > { %v2981_v52 = vrot.slane %v2965_v22, %v2973_v17 }
 0x2a8   : > { %v2996_v44 = vcombine.low %v2974_v45, %v2981_v52 }
 0x2aa   : > { %v3004_v13 = vrot.slane %v2996_v44, %v2973_v17 }
 0x2c7   : > { %v2832_v63 = vpop.f32.mrb[4].mxu1 }
 0x2c8   : > { %v2833_v18 = vadd.f32 %v2832_v63, %v2235_v32  ;;  %v2834_v24 = vpop.f32.mrb[5].mxu1 }
 0x2c9   : > { %v2835_v19 = vadd.f32 %v2834_v24, %v2235_v32 }
 0x2ca   : > { %v3489_v28 = vmul.f32 -1.442695, %v2833_v18 }
 0x2cb   : > { %v3490_v0 = vmul.f32 -1.442695, %v2835_v19 }
 0x2cc   : > { %4737 = vpow2.f32 %v3489_v28 }
 0x2cd   : > { %4739 = vpow2.f32 %v3490_v0 }
 0x2d6   : > { %v4738_v41 = vpop.eup %4737 }
 0x2d7   : > { %v4740_v59 = vpop.eup %4739  ;;  %v2936_v60 = vadd.f32 1.0, %v4738_v41 }
 0x2d8   : > { %v2937_v37 = vadd.f32 1.0, %v4740_v59 }
 0x2d9   : > { %4741 = vrcp.f32 %v2936_v60 }
 0x2da   : > { %4743 = vrcp.f32 %v2937_v37 }
 0x2e3   : > { %v4742_v15 = vpop.eup %4741 }
 0x2e4   : > { %v4744_v34 = vpop.eup %4743 }
 0x2e5   : > { %v2966_v21 = vcombine.low %v4742_v15, %v4744_v34 }
 0x2e7   : > { %v2988_v38 = vrot.slane %v2966_v21, %v2973_v17 }
 0x307   : > { %v2903_v3 = vpop.f32.mrb[6].mxu1 }
 0x308   : > { %v2904_v62 = vadd.f32 %v2903_v3, %v2235_v32  ;;  %v2905_v50 = vpop.f32.mrb[7].mxu1 }
 0x309   : > { %v2906_v14 = vadd.f32 %v2905_v50, %v2235_v32 }
 0x30a   : > { %v3491_v43 = vmul.f32 -1.442695, %v2904_v62 }
 0x30b   : > { %v3492_v31 = vmul.f32 -1.442695, %v2906_v14 }
 0x30c   : > { %4745 = vpow2.f32 %v3491_v43 }
 0x30d   : > { %4747 = vpow2.f32 %v3492_v31 }
 0x316   : > { %v4746_v49 = vpop.eup %4745 }
 0x317   : > { %v4748_v56 = vpop.eup %4747  ;;  %v2938_v27 = vadd.f32 1.0, %v4746_v49 }
 0x318   : > { %v2939_v29 = vadd.f32 1.0, %v4748_v56 }
 0x319   : > { %4749 = vrcp.f32 %v2938_v27 }
 0x31a   : > { %4751 = vrcp.f32 %v2939_v29 }
 0x323   : > { %v4750_v58 = vpop.eup %4749 }
 0x324   : > { %v4752_v35 = vpop.eup %4751 }
 0x325   : > { %v2967_v46 = vcombine.low %v4750_v58, %v4752_v35 }
 0x327   : > { %v2995_v4 = vrot.slane %v2967_v46, %v2973_v17 }
 0x329   : > { %v2997_v1 = vcombine.low %v2988_v38, %v2995_v4 }
 0x32b   : > { %v3011_v32 = vrot.slane %v2997_v1, %v2973_v17 }
 0x32d   : > { %v3012_v9 = vcombine.low %v3004_v13, %v3011_v32 }
 0x32f   : > { %3014 = vst [vmem:[%s220_s17] sm:$0xff] %v3012_v9 }
 0x330   : > { %4770 = shalt.err (!%p4767_p3)
}
 0x331   : > { %s4771_s12 = scalar_lea.hbm %s5871_s24, 128  ;;  %s4775_s11 = scalar_lea.hbm %s5918_s5, 256 }
 0x332   : > { %p4772_p4 = scmp.ne.s32.totalorder %s5871_s24, %s4771_s12  ;;  %p4776_p9 = scmp.lt.u32.totalorder %s5871_s24, %s5918_s5 }
 0x333   : > { %p4777_p10 = scmp.lt.u32.totalorder %s4775_s11, %s4771_s12  ;;  %p4779_p12 = scmp.lt.u32.totalorder %s4771_s12, %s5871_s24 }
 0x334   : > { %p4773_p7 = pnand %p4772_p4, %p4892_p5 }
 0x335   : > { %p4778_p11 = por %p4777_p10, %p4776_p9 }
 0x336   : > { %p4774_p8 = pneg %p4773_p7 }
 0x337   : > { %p4780_p13 = por %p4779_p12, %p4778_p11 }
 0x339   : > { %p4781_p0 = pnand %p4780_p13, %p4774_p8 }
 0x33b   : > { %4784 = shalt.err (!%p4781_p0)
}
 0x33c   : > { %4167 = dma.vmem_to_hbm [thread:$0]  (%p4892_p5), %s5873_s18, 128, %s5871_s24, %s3016_s26  }
 0x33d PF: > { %p4173_p1 = scmp.ge.s32.totalorder %s4819_s23, 2  ;;  %s3042_s15 = sand.u32 1, %s4807_s20  }
 0x33e   : > { %s3043_s16 = scalar_lea.sflag [#allocation4], %s3042_s15 }
 0x33f   : > { %p4170_p2 = pnand %p4173_p1, %p4896_p6 }
 0x341   : > { %4802 = dma.done.wait (!%p4170_p2), %s3043_s16, 128  }
 0x342   : > { %4804 = vsyncadd (!%p4170_p2), %s3043_s16, 4294967168  ;;  %p17_p3 = scmp.ge.s32.totalorder %s4880_s25, 4   ;;  %s5923_s20 = smov %s4811_s21 }
 0x343   : > { %s5924_s21 = smov %s4815_s22  ;;  %s5925_s22 = smov %s4890_s28 }
 0x344   : > { %s5926_s23 = smov %s4880_s25  ;;  %19 = sbr.rel (!%p17_p3) target bundleno = 6 (0x6), region = 75 }
 0x34b   :  { %3048 = vsyncpa [#allocation4], 1 }
 0x34c   :  { %3050 = vsyncpa [#allocation4 + $0x1], 1 }

</bundles_post_ra>
